<compile_context>
chip_gen: v7x
topology: tpu7x:2x2x1
jax: 0.10.0
libtpu: 0.0.40
codegen_flags: <defaults>
</compile_context>

<pallas_src>
import math
from functools import partial

import jax
import jax.numpy as jnp
from jax import lax
from jax.experimental import pallas as pl
from jax.experimental.pallas import tpu as pltpu


# ----------------------------------------------------------------------------
# Generation-aware VMEM limit (review: 64 MiB is the *entire* VMEM on v7x).
# ----------------------------------------------------------------------------

def _vmem_limit_bytes():
    try:
        cap = int(pltpu.get_tpu_info().vmem_capacity_bytes)
    except Exception:
        cap = 64 * 1024 * 1024          # conservative fallback (works on every gen)
    # ~48 MiB on v7x (64 MiB physical), ~96 MiB on v5e/v6e (128 MiB physical).
    return min((cap * 3) // 4, 100 * 1024 * 1024)


# ----------------------------------------------------------------------------
# Tiled projection kernel:  y = [LayerNorm](x) @ W [+ b]   (bf16 MXU, f32 accum)
# ----------------------------------------------------------------------------

def _proj_kernel(*refs, ln: bool, bias: bool, eps: float, mxu_dtype):
    if ln:
        x_ref, g_ref, bt_ref, *rest = refs
    else:
        x_ref, *rest = refs
    if bias:
        w_ref, b_ref, o_ref = rest
    else:
        w_ref, o_ref = rest

    x = x_ref[...]                                            # (tm, K)
    if ln:
        x = x.astype(jnp.float32)
        mu = jnp.mean(x, axis=-1, keepdims=True)
        xc = x - mu
        var = jnp.mean(xc * xc, axis=-1, keepdims=True)
        x = xc * lax.rsqrt(var + eps) * g_ref[...] + bt_ref[...]
    y = jnp.dot(x.astype(mxu_dtype), w_ref[...],
                preferred_element_type=jnp.float32)
    if bias:
        y = y + b_ref[...]
    o_ref[...] = y.astype(o_ref.dtype)


def fused_projection(x, w, b=None, gamma=None, beta=None, *, eps=1e-5, tm_max=512,
                     mxu_dtype=jnp.float32, out_dtype=jnp.float32, vmem_limit=None):
    """Row-tiled y = LayerNorm?(x) @ w (+ b).  x:(M,K), w:(K,N)."""
    M, K = x.shape
    N = w.shape[1]
    tm = M if M <= tm_max else tm_max
    grid = (pl.cdiv(M, tm),)
    ln = gamma is not None
    bias = b is not None
    if vmem_limit is None:
        vmem_limit = _vmem_limit_bytes()

    args = [x]
    in_specs = [pl.BlockSpec((tm, K), lambda i: (i, 0))]
    if ln:
        args += [gamma.reshape(1, K).astype(jnp.float32),
                 beta.reshape(1, K).astype(jnp.float32)]
        in_specs += [pl.BlockSpec((1, K), lambda i: (0, 0)),
                     pl.BlockSpec((1, K), lambda i: (0, 0))]
    args.append(w.astype(mxu_dtype))
    # TODO(synk): add an N (output-column) grid axis for very large D so the whole
    #             (K, N) weight does not need to be VMEM-resident.
    in_specs.append(pl.BlockSpec((K, N), lambda i: (0, 0)))
    if bias:
        args.append(b.reshape(1, N).astype(jnp.float32))
        in_specs.append(pl.BlockSpec((1, N), lambda i: (0, 0)))

    return pl.pallas_call(
        partial(_proj_kernel, ln=ln, bias=bias, eps=eps, mxu_dtype=mxu_dtype),
        out_shape=jax.ShapeDtypeStruct((M, N), out_dtype),
        grid=grid,
        in_specs=in_specs,
        out_specs=pl.BlockSpec((tm, N), lambda i: (i, 0)),
        compiler_params=pltpu.CompilerParams(
            dimension_semantics=("parallel",),
            vmem_limit_bytes=vmem_limit),
    )(*args)


# ----------------------------------------------------------------------------
# Positional scores.  p_ext has a zero row prepended, so the zero-padded (T, T+1)
# score slab is ONE matmul + ONE aligned store per head (no masked column stores).
# ----------------------------------------------------------------------------

def _pos_score_kernel(q_ref, pext_ref, vb_ref, xpad_ref, *, hb, mxu_dtype):
    # q_ref    : (1, T, 1, hb, dh)  query plane of the fused qkv tensor (mxu_dtype)
    # pext_ref : (T+1, hb, dh)      projected positional embeddings, row 0 == 0
    # vb_ref   : (hb, dh)           v_bias (mxu_dtype)
    # xpad_ref : (1, hb, T, T+1)    zero-padded positional scores (f32)
    for j in range(hb):                                       # static unroll over heads
        q = q_ref[0, :, 0, j, :]                              # (T, dh)
        p = pext_ref[:, j, :]                                 # (T+1, dh)
        qb = (q + vb_ref[j:j + 1, :]).astype(mxu_dtype)
        xpad_ref[0, j, :, :] = lax.dot_general(
            qb, p, (((1,), (1,)), ((), ())),
            preferred_element_type=jnp.float32)               # (T, T+1): pad col is free


# ----------------------------------------------------------------------------
# Fused attention: content scores + shifted pos + mask + softmax + attn @ V.
# Output block is lane-dense: (1, T, hb*dh) of a (B, T, D) array.
# ----------------------------------------------------------------------------

def _attn_kernel(qkv_ref, xs_ref, u_ref, mask_ref, o_ref, *,
                 hb, dh, inv_sqrt_dim, mxu_dtype):
    # qkv_ref : (1, T, 3, hb, dh)  fused q/k/v (mxu_dtype)
    # xs_ref  : (1, hb, T+1, T)    padded pos scores reinterpreted; rows 1: == shifted
    # u_ref   : (hb, dh)           u_bias (mxu_dtype)
    # mask_ref: (1, Tm, T) int32   nonzero = masked key (Tm is 1 or T)
    # o_ref   : (1, T, hb*dh)      context block, lane-dense
    mask = mask_ref[0] != 0                                   # (Tm, T)
    neg_inf = jnp.float32(-jnp.inf)                           # matches masked_fill(-inf)
    # TODO(synk): at production T, move heads to a grid axis / lax.fori_loop so the
    #             (T,T) f32 temporaries of successive heads do not overlap in VMEM.
    for j in range(hb):                                       # static unroll over heads
        q = qkv_ref[0, :, 0, j, :]                            # (T, dh)
        k = qkv_ref[0, :, 1, j, :]
        v = qkv_ref[0, :, 2, j, :]
        qb = (q + u_ref[j:j + 1, :]).astype(mxu_dtype)
        content = lax.dot_general(qb, k, (((1,), (1,)), ((), ())),
                                  preferred_element_type=jnp.float32)     # (T, T)
        pos_shifted = xs_ref[0, j, 1:, :]                     # (T, T): drop first row
        score = (content + pos_shifted) * inv_sqrt_dim
        score = jnp.where(mask, neg_inf, score)
        score = score - jnp.max(score, axis=-1, keepdims=True)
        e = jnp.exp(score)
        denom = jnp.sum(e, axis=-1, keepdims=True)
        attn = e * pl.reciprocal(denom, approx=True)          # divide on the EUP slot
        # TODO(synk): attention dropout (p=0.1) is identity in eval mode.
        ctx = jnp.dot(attn.astype(mxu_dtype), v,
                      preferred_element_type=jnp.float32)     # (T, dh)
        o_ref[0, :, j * dh:(j + 1) * dh] = ctx.astype(o_ref.dtype)


# ----------------------------------------------------------------------------
# Head-block picker: generation-aware VMEM budget incl. in-kernel (T,T) temporaries.
# ----------------------------------------------------------------------------

def _pick_head_block(num_heads, seq_len, d_head, *, vmem_budget, mxu_bytes=2):
    def legal(hb):
        if num_heads % hb:
            return False
        if hb == num_heads:
            return True
        # (8,128) BlockSpec rule on (..., hb, dh) inputs and the (T, hb*dh) output.
        return hb % 8 == 0 and (hb * d_head) % 128 == 0

    for hb in range(num_heads, 0, -1):
        if not legal(hb):
            continue
        io = (seq_len * 3 * hb * d_head * mxu_bytes            # qkv tile
              + hb * (seq_len + 1) * seq_len * 4               # padded pos-score tile
              + seq_len * hb * d_head * mxu_bytes)             # context tile
        interm = 4 * hb * seq_len * seq_len * 4                # content/pos/exp/attn f32
        if 2 * io + interm <= vmem_budget:                     # double-buffered I/O
            return hb
    for hb in range(1, num_heads + 1):
        if legal(hb):
            return hb
    return num_heads


# ----------------------------------------------------------------------------
# Module forward (plain-JAX glue is only free reshapes, a tiny concat and the
# sinusoid table).
# ----------------------------------------------------------------------------

def sinusoidal_positional_encoding(length, d_model):
    # TODO(synk): PositionalEncoding class body not given; standard sinusoidal used.
    position = jnp.arange(length, dtype=jnp.float32)[:, None]
    div_term = jnp.exp(jnp.arange(0, d_model, 2, dtype=jnp.float32)
                       * (-math.log(10000.0) / d_model))
    pe = jnp.zeros((length, d_model), jnp.float32)
    pe = pe.at[:, 0::2].set(jnp.sin(position * div_term))
    pe = pe.at[:, 1::2].set(jnp.cos(position * div_term))
    return pe


def mhsa_forward(params, inputs, mask=None, *, num_heads,
                 mxu_dtype=jnp.bfloat16, eps=1e-5):
    B, T, D = inputs.shape
    H = num_heads
    dh = D // H
    inv_sqrt_dim = 1.0 / math.sqrt(D)
    vmem_limit = _vmem_limit_bytes()

    if mask is None:
        mask = jnp.zeros((B, 1, T), jnp.bool_)
    if mask.ndim != 3 or mask.shape[2] != T or mask.shape[1] not in (1, T):
        raise NotImplementedError("mask must be (batch, 1, time) or (batch, time, time)")
    Tm = mask.shape[1]
    mask_i32 = mask.astype(jnp.int32)

    pos = sinusoidal_positional_encoding(T, D)                 # (T, D): shared over batch

    # LayerNorm + fused Q|K|V projection (the activation is read from HBM once).
    qkv = fused_projection(inputs.reshape(B * T, D), params["w_qkv"], params["b_qkv"],
                           gamma=params["ln_gamma"], beta=params["ln_beta"], eps=eps,
                           mxu_dtype=mxu_dtype, out_dtype=mxu_dtype,
                           vmem_limit=vmem_limit)                            # (B*T, 3D)
    # Positional projection (no bias / no LN); prepend a zero row so the padded
    # positional-score slab is a single matmul + aligned store.
    p = fused_projection(pos, params["w_pos"], mxu_dtype=mxu_dtype,
                         out_dtype=mxu_dtype, vmem_limit=vmem_limit)         # (T, D)
    p_ext = jnp.concatenate([jnp.zeros((1, D), p.dtype), p], axis=0)         # (T+1, D)

    qkv5 = qkv.reshape(B, T, 3, H, dh)       # free row-major reinterpretations
    p_ext3 = p_ext.reshape(T + 1, H, dh)
    u_bias = params["u_bias"].astype(mxu_dtype)
    v_bias = params["v_bias"].astype(mxu_dtype)

    hb = _pick_head_block(H, T, dh, vmem_budget=vmem_limit // 2,
                          mxu_bytes=jnp.dtype(mxu_dtype).itemsize)
    grid = (B, H // hb)                      # both parallel: shards across v7x's 2 TCs
    cparams = pltpu.CompilerParams(
        dimension_semantics=("parallel", "parallel"),
        vmem_limit_bytes=vmem_limit)

    # Pass 1: positional scores stored zero-padded (B, H, T, T+1) f32.
    xpad = pl.pallas_call(
        partial(_pos_score_kernel, hb=hb, mxu_dtype=mxu_dtype),
        out_shape=jax.ShapeDtypeStruct((B, H, T, T + 1), jnp.float32),
        grid=grid,
        in_specs=[
            pl.BlockSpec((1, T, 1, hb, dh), lambda b, g: (b, 0, 0, g, 0)),
            pl.BlockSpec((T + 1, hb, dh), lambda b, g: (0, g, 0)),
            pl.BlockSpec((hb, dh), lambda b, g: (g, 0)),
        ],
        out_specs=pl.BlockSpec((1, hb, T, T + 1), lambda b, g: (b, g, 0, 0)),
        compiler_params=cparams,
    )(qkv5, p_ext3, v_bias)

    # Transformer-XL relative shift == free reinterpretation of the padded scores
    # (bitcast in XLA; the attention kernel drops row 0 of each (T+1, T) slab).
    xshift_src = xpad.reshape(B, H, T + 1, T)

    # Pass 2: content scores + shifted pos + mask + softmax + attn @ V (all in VMEM),
    # context written lane-dense into a (B, T, D) array.
    ctx = pl.pallas_call(
        partial(_attn_kernel, hb=hb, dh=dh, inv_sqrt_dim=inv_sqrt_dim,
                mxu_dtype=mxu_dtype),
        out_shape=jax.ShapeDtypeStruct((B, T, D), mxu_dtype),
        grid=grid,
        in_specs=[
            pl.BlockSpec((1, T, 3, hb, dh), lambda b, g: (b, 0, 0, g, 0)),
            pl.BlockSpec((1, hb, T + 1, T), lambda b, g: (b, g, 0, 0)),
            pl.BlockSpec((hb, dh), lambda b, g: (g, 0)),
            pl.BlockSpec((1, Tm, T), lambda b, g: (b, 0, 0)),
        ],
        out_specs=pl.BlockSpec((1, T, hb * dh), lambda b, g: (b, 0, g)),
        compiler_params=cparams,
    )(qkv5, xshift_src, u_bias, mask_i32)

    out = fused_projection(ctx.reshape(B * T, D), params["w_out"], params["b_out"],
                           mxu_dtype=mxu_dtype, out_dtype=jnp.float32,
                           vmem_limit=vmem_limit)
    # TODO(synk): module output dropout (p=0.1) is identity in eval mode.
    return out.reshape(B, T, D)


# ----------------------------------------------------------------------------
# Parameters and pure-JAX reference (eval-mode replica of the PyTorch module).
# ----------------------------------------------------------------------------

def init_params(key, d_model, num_heads):
    dh = d_model // num_heads
    ks = jax.random.split(key, 7)

    def xavier(k, fan_in, fan_out, shape=None):
        shape = (fan_in, fan_out) if shape is None else shape
        limit = math.sqrt(6.0 / (fan_in + fan_out))
        return jax.random.uniform(k, shape, jnp.float32, -limit, limit)

    wq = xavier(ks[0], d_model, d_model)
    wk = xavier(ks[1], d_model, d_model)
    wv = xavier(ks[2], d_model, d_model)
    return {
        "ln_gamma": jnp.ones((d_model,), jnp.float32),
        "ln_beta": jnp.zeros((d_model,), jnp.float32),
        "w_qkv": jnp.concatenate([wq, wk, wv], axis=1),          # (D, 3D), fused
        "b_qkv": jnp.zeros((3 * d_model,), jnp.float32),
        "w_pos": xavier(ks[3], d_model, d_model),                # pos_proj: no bias
        "w_out": xavier(ks[4], d_model, d_model),
        "b_out": jnp.zeros((d_model,), jnp.float32),
        "u_bias": xavier(ks[5], num_heads, dh, shape=(num_heads, dh)),
        "v_bias": xavier(ks[6], num_heads, dh, shape=(num_heads, dh)),
    }


def _relative_shift_ref(pos_score):
    b, h, t1, t2 = pos_score.shape
    zeros = jnp.zeros((b, h, t1, 1), pos_score.dtype)
    padded = jnp.concatenate([zeros, pos_score], axis=-1)
    padded = padded.reshape(b, h, t2 + 1, t1)
    return padded[:, :, 1:].reshape(b, h, t1, t2)


def reference(params, inputs, mask, *, num_heads):
    B, T, D = inputs.shape
    H = num_heads
    dh = D // H
    mu = jnp.mean(inputs, axis=-1, keepdims=True)
    var = jnp.mean((inputs - mu) ** 2, axis=-1, keepdims=True)
    x = (inputs - mu) / jnp.sqrt(var + 1e-5) * params["ln_gamma"] + params["ln_beta"]

    pos = jnp.broadcast_to(sinusoidal_positional_encoding(T, D), (B, T, D))

    wq, wk, wv = params["w_qkv"][:, :D], params["w_qkv"][:, D:2 * D], params["w_qkv"][:, 2 * D:]
    bq, bk, bv = params["b_qkv"][:D], params["b_qkv"][D:2 * D], params["b_qkv"][2 * D:]

    q = (x @ wq + bq).reshape(B, T, H, dh)
    k = (x @ wk + bk).reshape(B, T, H, dh).transpose(0, 2, 1, 3)
    v = (x @ wv + bv).reshape(B, T, H, dh).transpose(0, 2, 1, 3)
    p = (pos @ params["w_pos"]).reshape(B, T, H, dh).transpose(0, 2, 1, 3)

    content = jnp.einsum("bqhd,bhkd->bhqk", q + params["u_bias"], k)
    pos_score = jnp.einsum("bqhd,bhkd->bhqk", q + params["v_bias"], p)
    pos_score = _relative_shift_ref(pos_score)

    score = (content + pos_score) / math.sqrt(D)
    score = jnp.where(mask[:, None, :, :].astype(bool), -jnp.inf, score)
    attn = jax.nn.softmax(score, axis=-1)
    ctx = jnp.einsum("bhqk,bhkd->bqhd", attn, v).reshape(B, T, D)
    return ctx @ params["w_out"] + params["b_out"]


# ----------------------------------------------------------------------------
# Main
# ----------------------------------------------------------------------------

if __name__ == "__main__":
    B, T, D, H = 2, 8, 32, 4     # batch, seq, d_model, num_heads (d_head = 8)

    root = jax.random.PRNGKey(0)
    kp, kx = jax.random.split(root, 2)
    params = init_params(kp, D, H)
    inputs = jax.random.normal(kx, (B, T, D), jnp.float32)
    # mask: (B, 1, T) boolean; True = masked.  Mask the last 2 key positions of batch 1.
    mask = jnp.zeros((B, 1, T), jnp.bool_).at[1, 0, -2:].set(True)

    ref = reference(params, inputs, mask, num_heads=H)

    # f32 MXU-operand path: tight check against the f32 reference.
    fwd_f32 = jax.jit(partial(mhsa_forward, num_heads=H, mxu_dtype=jnp.float32))
    out_f32 = jax.block_until_ready(fwd_f32(params, inputs, mask))
    assert out_f32.shape == (B, T, D)
    err_f32 = float(jnp.max(jnp.abs(out_f32 - ref)))
    assert jnp.allclose(out_f32, ref, atol=5e-3, rtol=5e-3), f"f32 max_err={err_f32}"

    # bf16 MXU-operand path (production default on v6e/v7x): looser check.
    fwd_bf16 = jax.jit(partial(mhsa_forward, num_heads=H, mxu_dtype=jnp.bfloat16))
    out_bf16 = jax.block_until_ready(fwd_bf16(params, inputs, mask))
    err_bf16 = float(jnp.max(jnp.abs(out_bf16 - ref)))
    assert jnp.allclose(out_bf16, ref, atol=1e-1, rtol=1e-1), f"bf16 max_err={err_bf16}"

    print("KERNEL_OK")
</pallas_src>

<mosaic_0001>
module attributes {stable_mosaic.version = 11 : i64} {
  func.func @_proj_kernel(%arg0: i32, %arg1: memref<8x32xf32, #tpu.memory_space<vmem>>, %arg2: memref<32x32xf32, #tpu.memory_space<vmem>>, %arg3: memref<8x32xf32, #tpu.memory_space<vmem>>) attributes {dimension_semantics = [#tpu.dimension_semantics<parallel>], iteration_bounds = array<i64: 1>, scalar_prefetch = 0 : i64, scratch_operands = 0 : i64, tpu.core_type = #tpu.core_type<tc>, window_params = [{transform_indices = @transform_0, window_bounds = array<i64: 8, 32>}, {pipeline_mode = #tpu.pipeline_mode<synchronous>, transform_indices = @transform_1, window_bounds = array<i64: 32, 32>}, {transform_indices = @transform_2, window_bounds = array<i64: 8, 32>}]} {
    %c0 = arith.constant 0 : index
    %c0_0 = arith.constant 0 : index
    %0 = vector.load %arg1[%c0, %c0_0] : memref<8x32xf32, #tpu.memory_space<vmem>>, vector<8x32xf32>
    %c0_1 = arith.constant 0 : index
    %c0_2 = arith.constant 0 : index
    %1 = vector.load %arg2[%c0_1, %c0_2] : memref<32x32xf32, #tpu.memory_space<vmem>>, vector<32x32xf32>
    %cst = arith.constant dense<0.000000e+00> : vector<8x32xf32>
    %2 = tpu.matmul %0, %1, %cst {dimension_numbers = #tpu.dot_dimension_numbers<[1], [0], [0], [1], [0, 0, 1, 1], [], []>} : vector<8x32xf32>, vector<32x32xf32>, vector<8x32xf32> -> vector<8x32xf32>
    %c0_3 = arith.constant 0 : index
    %c0_4 = arith.constant 0 : index
    %3 = vector.load %arg3[%c0_3, %c0_4] : memref<8x32xf32, #tpu.memory_space<vmem>>, vector<8x32xf32>
    tpu.vector_store %arg3[%c0_3, %c0_4], %2 {strides = array<i32>} : memref<8x32xf32, #tpu.memory_space<vmem>>, vector<8x32xf32>,
    return
  }
  func.func @transform_0(%arg0: i32) -> (i32, i32) {
    %c0_i32 = arith.constant 0 : i32
    %c0_i32_0 = arith.constant 0 : i32
    return %arg0, %c0_i32 : i32, i32
  }
  func.func @transform_1(%arg0: i32) -> (i32, i32) {
    %c0_i32 = arith.constant 0 : i32
    %c0_i32_0 = arith.constant 0 : i32
    %c0_i32_1 = arith.constant 0 : i32
    return %c0_i32, %c0_i32_0 : i32, i32
  }
  func.func @transform_2(%arg0: i32) -> (i32, i32) {
    %c0_i32 = arith.constant 0 : i32
    %c0_i32_0 = arith.constant 0 : i32
    return %arg0, %c0_i32 : i32, i32
  }
}

module attributes {stable_mosaic.version = 11 : i64} {
  func.func @_proj_kernel(%arg0: i32, %arg1: memref<16x32xf32, #tpu.memory_space<vmem>>, %arg2: memref<1x32xf32, #tpu.memory_space<vmem>>, %arg3: memref<1x32xf32, #tpu.memory_space<vmem>>, %arg4: memref<32x96xf32, #tpu.memory_space<vmem>>, %arg5: memref<1x96xf32, #tpu.memory_space<vmem>>, %arg6: memref<16x96xf32, #tpu.memory_space<vmem>>) attributes {dimension_semantics = [#tpu.dimension_semantics<parallel>], iteration_bounds = array<i64: 1>, scalar_prefetch = 0 : i64, scratch_operands = 0 : i64, tpu.core_type = #tpu.core_type<tc>, window_params = [{transform_indices = @transform_0, window_bounds = array<i64: 16, 32>}, {pipeline_mode = #tpu.pipeline_mode<synchronous>, transform_indices = @transform_1, window_bounds = array<i64: 1, 32>}, {pipeline_mode = #tpu.pipeline_mode<synchronous>, transform_indices = @transform_2, window_bounds = array<i64: 1, 32>}, {pipeline_mode = #tpu.pipeline_mode<synchronous>, transform_indices = @transform_3, window_bounds = array<i64: 32, 96>}, {pipeline_mode = #tpu.pipeline_mode<synchronous>, transform_indices = @transform_4, window_bounds = array<i64: 1, 96>}, {transform_indices = @transform_5, window_bounds = array<i64: 16, 96>}]} {
    %c0 = arith.constant 0 : index
    %c0_0 = arith.constant 0 : index
    %0 = vector.load %arg1[%c0, %c0_0] : memref<16x32xf32, #tpu.memory_space<vmem>>, vector<16x32xf32>
    %cst = arith.constant dense<0.000000e+00> : vector<16xf32>
    %1 = vector.multi_reduction <add>, %0, %cst [1] : vector<16x32xf32> to vector<16xf32>
    %2 = vector.shape_cast %1 : vector<16xf32> to vector<16x1xf32>
    %cst_1 = arith.constant 3.200000e+01 : f32
    %3 = vector.broadcast %cst_1 : f32 to vector<16x1xf32>
    %4 = arith.divf %2, %3 : vector<16x1xf32>
    %5 = vector.broadcast %4 : vector<16x1xf32> to vector<16x32xf32>
    %6 = arith.subf %0, %5 : vector<16x32xf32>
    %7 = arith.mulf %6, %6 : vector<16x32xf32>
    %cst_2 = arith.constant dense<0.000000e+00> : vector<16xf32>
    %8 = vector.multi_reduction <add>, %7, %cst_2 [1] : vector<16x32xf32> to vector<16xf32>
    %9 = vector.shape_cast %8 : vector<16xf32> to vector<16x1xf32>
    %cst_3 = arith.constant 3.200000e+01 : f32
    %10 = vector.broadcast %cst_3 : f32 to vector<16x1xf32>
    %11 = arith.divf %9, %10 : vector<16x1xf32>
    %cst_4 = arith.constant 9.99999974E-6 : f32
    %12 = vector.broadcast %cst_4 : f32 to vector<16x1xf32>
    %13 = arith.addf %11, %12 : vector<16x1xf32>
    %14 = math.rsqrt %13 : vector<16x1xf32>
    %15 = vector.broadcast %14 : vector<16x1xf32> to vector<16x32xf32>
    %16 = arith.mulf %6, %15 : vector<16x32xf32>
    %c0_5 = arith.constant 0 : index
    %c0_6 = arith.constant 0 : index
    %17 = vector.load %arg2[%c0_5, %c0_6] : memref<1x32xf32, #tpu.memory_space<vmem>>, vector<1x32xf32>
    %18 = vector.broadcast %17 : vector<1x32xf32> to vector<16x32xf32>
    %19 = arith.mulf %16, %18 : vector<16x32xf32>
    %c0_7 = arith.constant 0 : index
    %c0_8 = arith.constant 0 : index
    %20 = vector.load %arg3[%c0_7, %c0_8] : memref<1x32xf32, #tpu.memory_space<vmem>>, vector<1x32xf32>
    %21 = vector.broadcast %20 : vector<1x32xf32> to vector<16x32xf32>
    %22 = arith.addf %19, %21 : vector<16x32xf32>
    %c0_9 = arith.constant 0 : index
    %c0_10 = arith.constant 0 : index
    %23 = vector.load %arg4[%c0_9, %c0_10] : memref<32x96xf32, #tpu.memory_space<vmem>>, vector<32x96xf32>
    %cst_11 = arith.constant dense<0.000000e+00> : vector<16x96xf32>
    %24 = tpu.matmul %22, %23, %cst_11 {dimension_numbers = #tpu.dot_dimension_numbers<[1], [0], [0], [1], [0, 0, 1, 1], [], []>} : vector<16x32xf32>, vector<32x96xf32>, vector<16x96xf32> -> vector<16x96xf32>
    %c0_12 = arith.constant 0 : index
    %c0_13 = arith.constant 0 : index
    %25 = vector.load %arg5[%c0_12, %c0_13] : memref<1x96xf32, #tpu.memory_space<vmem>>, vector<1x96xf32>
    %26 = vector.broadcast %25 : vector<1x96xf32> to vector<16x96xf32>
    %27 = arith.addf %24, %26 : vector<16x96xf32>
    %c0_14 = arith.constant 0 : index
    %c0_15 = arith.constant 0 : index
    %28 = vector.load %arg6[%c0_14, %c0_15] : memref<16x96xf32, #tpu.memory_space<vmem>>, vector<16x96xf32>
    tpu.vector_store %arg6[%c0_14, %c0_15], %27 {strides = array<i32>} : memref<16x96xf32, #tpu.memory_space<vmem>>, vector<16x96xf32>,
    return
  }
  func.func @transform_0(%arg0: i32) -> (i32, i32) {
    %c0_i32 = arith.constant 0 : i32
    %c0_i32_0 = arith.constant 0 : i32
    return %arg0, %c0_i32 : i32, i32
  }
  func.func @transform_1(%arg0: i32) -> (i32, i32) {
    %c0_i32 = arith.constant 0 : i32
    %c0_i32_0 = arith.constant 0 : i32
    %c0_i32_1 = arith.constant 0 : i32
    return %c0_i32, %c0_i32_0 : i32, i32
  }
  func.func @transform_2(%arg0: i32) -> (i32, i32) {
    %c0_i32 = arith.constant 0 : i32
    %c0_i32_0 = arith.constant 0 : i32
    %c0_i32_1 = arith.constant 0 : i32
    return %c0_i32, %c0_i32_0 : i32, i32
  }
  func.func @transform_3(%arg0: i32) -> (i32, i32) {
    %c0_i32 = arith.constant 0 : i32
    %c0_i32_0 = arith.constant 0 : i32
    %c0_i32_1 = arith.constant 0 : i32
    return %c0_i32, %c0_i32_0 : i32, i32
  }
  func.func @transform_4(%arg0: i32) -> (i32, i32) {
    %c0_i32 = arith.constant 0 : i32
    %c0_i32_0 = arith.constant 0 : i32
    %c0_i32_1 = arith.constant 0 : i32
    return %c0_i32, %c0_i32_0 : i32, i32
  }
  func.func @transform_5(%arg0: i32) -> (i32, i32) {
    %c0_i32 = arith.constant 0 : i32
    %c0_i32_0 = arith.constant 0 : i32
    return %arg0, %c0_i32 : i32, i32
  }
}

module attributes {stable_mosaic.version = 11 : i64} {
  func.func @_pos_score_kernel(%arg0: i32, %arg1: i32, %arg2: memref<1x8x1x4x8xf32, #tpu.memory_space<vmem>>, %arg3: memref<9x4x8xf32, #tpu.memory_space<vmem>>, %arg4: memref<4x8xf32, #tpu.memory_space<vmem>>, %arg5: memref<1x4x8x9xf32, #tpu.memory_space<vmem>>) attributes {dimension_semantics = [#tpu.dimension_semantics<parallel>, #tpu.dimension_semantics<parallel>], iteration_bounds = array<i64: 2, 1>, scalar_prefetch = 0 : i64, scratch_operands = 0 : i64, tpu.core_type = #tpu.core_type<tc>, window_params = [{transform_indices = @transform_0, window_bounds = array<i64: 1, 8, 1, 4, 8>}, {transform_indices = @transform_1, window_bounds = array<i64: 9, 4, 8>}, {transform_indices = @transform_2, window_bounds = array<i64: 4, 8>}, {transform_indices = @transform_3, window_bounds = array<i64: 1, 4, 8, 9>}]} {
    %c0 = arith.constant 0 : index
    %c0_0 = arith.constant 0 : index
    %c0_1 = arith.constant 0 : index
    %c0_2 = arith.constant 0 : index
    %c0_3 = arith.constant 0 : index
    %0 = vector.load %arg2[%c0, %c0_0, %c0_1, %c0_2, %c0_3] : memref<1x8x1x4x8xf32, #tpu.memory_space<vmem>>, vector<1x8x1x1x8xf32>
    %1 = vector.shape_cast %0 : vector<1x8x1x1x8xf32> to vector<8x8xf32>
    %c0_4 = arith.constant 0 : index
    %c0_5 = arith.constant 0 : index
    %c0_6 = arith.constant 0 : index
    %2 = vector.load %arg3[%c0_4, %c0_5, %c0_6] : memref<9x4x8xf32, #tpu.memory_space<vmem>>, vector<9x1x8xf32>
    %3 = vector.shape_cast %2 : vector<9x1x8xf32> to vector<9x8xf32>
    %c0_7 = arith.constant 0 : index
    %c0_8 = arith.constant 0 : index
    %4 = vector.load %arg4[%c0_7, %c0_8] : memref<4x8xf32, #tpu.memory_space<vmem>>, vector<1x8xf32>
    %5 = vector.broadcast %4 : vector<1x8xf32> to vector<8x8xf32>
    %6 = arith.addf %1, %5 : vector<8x8xf32>
    %cst = arith.constant dense<0.000000e+00> : vector<8x9xf32>
    %7 = tpu.matmul %6, %3, %cst {dimension_numbers = #tpu.dot_dimension_numbers<[1], [1], [0], [0], [0, 0, 1, 0], [], []>} : vector<8x8xf32>, vector<9x8xf32>, vector<8x9xf32> -> vector<8x9xf32>
    %c0_9 = arith.constant 0 : index
    %c0_10 = arith.constant 0 : index
    %c0_11 = arith.constant 0 : index
    %c0_12 = arith.constant 0 : index
    %8 = vector.load %arg5[%c0_9, %c0_10, %c0_11, %c0_12] : memref<1x4x8x9xf32, #tpu.memory_space<vmem>>, vector<1x1x8x9xf32>
    %9 = vector.shape_cast %8 : vector<1x1x8x9xf32> to vector<8x9xf32>
    %10 = vector.shape_cast %7 : vector<8x9xf32> to vector<1x1x8x9xf32>
    tpu.vector_store %arg5[%c0_9, %c0_10, %c0_11, %c0_12], %10 {strides = array<i32>} : memref<1x4x8x9xf32, #tpu.memory_space<vmem>>, vector<1x1x8x9xf32>,
    %c0_13 = arith.constant 0 : index
    %c0_14 = arith.constant 0 : index
    %c0_15 = arith.constant 0 : index
    %c1 = arith.constant 1 : index
    %c0_16 = arith.constant 0 : index
    %11 = vector.load %arg2[%c0_13, %c0_14, %c0_15, %c1, %c0_16] : memref<1x8x1x4x8xf32, #tpu.memory_space<vmem>>, vector<1x8x1x1x8xf32>
    %12 = vector.shape_cast %11 : vector<1x8x1x1x8xf32> to vector<8x8xf32>
    %c0_17 = arith.constant 0 : index
    %c1_18 = arith.constant 1 : index
    %c0_19 = arith.constant 0 : index
    %13 = vector.load %arg3[%c0_17, %c1_18, %c0_19] : memref<9x4x8xf32, #tpu.memory_space<vmem>>, vector<9x1x8xf32>
    %14 = vector.shape_cast %13 : vector<9x1x8xf32> to vector<9x8xf32>
    %c1_20 = arith.constant 1 : index
    %c0_21 = arith.constant 0 : index
    %15 = vector.load %arg4[%c1_20, %c0_21] : memref<4x8xf32, #tpu.memory_space<vmem>>, vector<1x8xf32>
    %16 = vector.broadcast %15 : vector<1x8xf32> to vector<8x8xf32>
    %17 = arith.addf %12, %16 : vector<8x8xf32>
    %cst_22 = arith.constant dense<0.000000e+00> : vector<8x9xf32>
    %18 = tpu.matmul %17, %14, %cst_22 {dimension_numbers = #tpu.dot_dimension_numbers<[1], [1], [0], [0], [0, 0, 1, 0], [], []>} : vector<8x8xf32>, vector<9x8xf32>, vector<8x9xf32> -> vector<8x9xf32>
    %c0_23 = arith.constant 0 : index
    %c1_24 = arith.constant 1 : index
    %c0_25 = arith.constant 0 : index
    %c0_26 = arith.constant 0 : index
    %19 = vector.load %arg5[%c0_23, %c1_24, %c0_25, %c0_26] : memref<1x4x8x9xf32, #tpu.memory_space<vmem>>, vector<1x1x8x9xf32>
    %20 = vector.shape_cast %19 : vector<1x1x8x9xf32> to vector<8x9xf32>
    %21 = vector.shape_cast %18 : vector<8x9xf32> to vector<1x1x8x9xf32>
    tpu.vector_store %arg5[%c0_23, %c1_24, %c0_25, %c0_26], %21 {strides = array<i32>} : memref<1x4x8x9xf32, #tpu.memory_space<vmem>>, vector<1x1x8x9xf32>,
    %c0_27 = arith.constant 0 : index
    %c0_28 = arith.constant 0 : index
    %c0_29 = arith.constant 0 : index
    %c2 = arith.constant 2 : index
    %c0_30 = arith.constant 0 : index
    %22 = vector.load %arg2[%c0_27, %c0_28, %c0_29, %c2, %c0_30] : memref<1x8x1x4x8xf32, #tpu.memory_space<vmem>>, vector<1x8x1x1x8xf32>
    %23 = vector.shape_cast %22 : vector<1x8x1x1x8xf32> to vector<8x8xf32>
    %c0_31 = arith.constant 0 : index
    %c2_32 = arith.constant 2 : index
    %c0_33 = arith.constant 0 : index
    %24 = vector.load %arg3[%c0_31, %c2_32, %c0_33] : memref<9x4x8xf32, #tpu.memory_space<vmem>>, vector<9x1x8xf32>
    %25 = vector.shape_cast %24 : vector<9x1x8xf32> to vector<9x8xf32>
    %c2_34 = arith.constant 2 : index
    %c0_35 = arith.constant 0 : index
    %26 = vector.load %arg4[%c2_34, %c0_35] : memref<4x8xf32, #tpu.memory_space<vmem>>, vector<1x8xf32>
    %27 = vector.broadcast %26 : vector<1x8xf32> to vector<8x8xf32>
    %28 = arith.addf %23, %27 : vector<8x8xf32>
    %cst_36 = arith.constant dense<0.000000e+00> : vector<8x9xf32>
    %29 = tpu.matmul %28, %25, %cst_36 {dimension_numbers = #tpu.dot_dimension_numbers<[1], [1], [0], [0], [0, 0, 1, 0], [], []>} : vector<8x8xf32>, vector<9x8xf32>, vector<8x9xf32> -> vector<8x9xf32>
    %c0_37 = arith.constant 0 : index
    %c2_38 = arith.constant 2 : index
    %c0_39 = arith.constant 0 : index
    %c0_40 = arith.constant 0 : index
    %30 = vector.load %arg5[%c0_37, %c2_38, %c0_39, %c0_40] : memref<1x4x8x9xf32, #tpu.memory_space<vmem>>, vector<1x1x8x9xf32>
    %31 = vector.shape_cast %30 : vector<1x1x8x9xf32> to vector<8x9xf32>
    %32 = vector.shape_cast %29 : vector<8x9xf32> to vector<1x1x8x9xf32>
    tpu.vector_store %arg5[%c0_37, %c2_38, %c0_39, %c0_40], %32 {strides = array<i32>} : memref<1x4x8x9xf32, #tpu.memory_space<vmem>>, vector<1x1x8x9xf32>,
    %c0_41 = arith.constant 0 : index
    %c0_42 = arith.constant 0 : index
    %c0_43 = arith.constant 0 : index
    %c3 = arith.constant 3 : index
    %c0_44 = arith.constant 0 : index
    %33 = vector.load %arg2[%c0_41, %c0_42, %c0_43, %c3, %c0_44] : memref<1x8x1x4x8xf32, #tpu.memory_space<vmem>>, vector<1x8x1x1x8xf32>
    %34 = vector.shape_cast %33 : vector<1x8x1x1x8xf32> to vector<8x8xf32>
    %c0_45 = arith.constant 0 : index
    %c3_46 = arith.constant 3 : index
    %c0_47 = arith.constant 0 : index
    %35 = vector.load %arg3[%c0_45, %c3_46, %c0_47] : memref<9x4x8xf32, #tpu.memory_space<vmem>>, vector<9x1x8xf32>
    %36 = vector.shape_cast %35 : vector<9x1x8xf32> to vector<9x8xf32>
    %c3_48 = arith.constant 3 : index
    %c0_49 = arith.constant 0 : index
    %37 = vector.load %arg4[%c3_48, %c0_49] : memref<4x8xf32, #tpu.memory_space<vmem>>, vector<1x8xf32>
    %38 = vector.broadcast %37 : vector<1x8xf32> to vector<8x8xf32>
    %39 = arith.addf %34, %38 : vector<8x8xf32>
    %cst_50 = arith.constant dense<0.000000e+00> : vector<8x9xf32>
    %40 = tpu.matmul %39, %36, %cst_50 {dimension_numbers = #tpu.dot_dimension_numbers<[1], [1], [0], [0], [0, 0, 1, 0], [], []>} : vector<8x8xf32>, vector<9x8xf32>, vector<8x9xf32> -> vector<8x9xf32>
    %c0_51 = arith.constant 0 : index
    %c3_52 = arith.constant 3 : index
    %c0_53 = arith.constant 0 : index
    %c0_54 = arith.constant 0 : index
    %41 = vector.load %arg5[%c0_51, %c3_52, %c0_53, %c0_54] : memref<1x4x8x9xf32, #tpu.memory_space<vmem>>, vector<1x1x8x9xf32>
    %42 = vector.shape_cast %41 : vector<1x1x8x9xf32> to vector<8x9xf32>
    %43 = vector.shape_cast %40 : vector<8x9xf32> to vector<1x1x8x9xf32>
    tpu.vector_store %arg5[%c0_51, %c3_52, %c0_53, %c0_54], %43 {strides = array<i32>} : memref<1x4x8x9xf32, #tpu.memory_space<vmem>>, vector<1x1x8x9xf32>,
    return
  }
  func.func @transform_0(%arg0: i32, %arg1: i32) -> (i32, i32, i32, i32, i32) {
    %c0_i32 = arith.constant 0 : i32
    %c0_i32_0 = arith.constant 0 : i32
    %c0_i32_1 = arith.constant 0 : i32
    %c0_i32_2 = arith.constant 0 : i32
    return %arg0, %c0_i32, %c0_i32_0, %arg1, %c0_i32_1 : i32, i32, i32, i32, i32
  }
  func.func @transform_1(%arg0: i32, %arg1: i32) -> (i32, i32, i32) {
    %c0_i32 = arith.constant 0 : i32
    %c0_i32_0 = arith.constant 0 : i32
    %c0_i32_1 = arith.constant 0 : i32
    return %c0_i32, %arg1, %c0_i32_0 : i32, i32, i32
  }
  func.func @transform_2(%arg0: i32, %arg1: i32) -> (i32, i32) {
    %c0_i32 = arith.constant 0 : i32
    %c0_i32_0 = arith.constant 0 : i32
    return %arg1, %c0_i32 : i32, i32
  }
  func.func @transform_3(%arg0: i32, %arg1: i32) -> (i32, i32, i32, i32) {
    %c0_i32 = arith.constant 0 : i32
    %c0_i32_0 = arith.constant 0 : i32
    %c0_i32_1 = arith.constant 0 : i32
    return %arg0, %arg1, %c0_i32, %c0_i32_0 : i32, i32, i32, i32
  }
}

module attributes {stable_mosaic.version = 11 : i64} {
  func.func @_proj_kernel(%arg0: i32, %arg1: memref<16x32xf32, #tpu.memory_space<vmem>>, %arg2: memref<32x32xf32, #tpu.memory_space<vmem>>, %arg3: memref<1x32xf32, #tpu.memory_space<vmem>>, %arg4: memref<16x32xf32, #tpu.memory_space<vmem>>) attributes {dimension_semantics = [#tpu.dimension_semantics<parallel>], iteration_bounds = array<i64: 1>, scalar_prefetch = 0 : i64, scratch_operands = 0 : i64, tpu.core_type = #tpu.core_type<tc>, window_params = [{transform_indices = @transform_0, window_bounds = array<i64: 16, 32>}, {pipeline_mode = #tpu.pipeline_mode<synchronous>, transform_indices = @transform_1, window_bounds = array<i64: 32, 32>}, {pipeline_mode = #tpu.pipeline_mode<synchronous>, transform_indices = @transform_2, window_bounds = array<i64: 1, 32>}, {transform_indices = @transform_3, window_bounds = array<i64: 16, 32>}]} {
    %c0 = arith.constant 0 : index
    %c0_0 = arith.constant 0 : index
    %0 = vector.load %arg1[%c0, %c0_0] : memref<16x32xf32, #tpu.memory_space<vmem>>, vector<16x32xf32>
    %c0_1 = arith.constant 0 : index
    %c0_2 = arith.constant 0 : index
    %1 = vector.load %arg2[%c0_1, %c0_2] : memref<32x32xf32, #tpu.memory_space<vmem>>, vector<32x32xf32>
    %cst = arith.constant dense<0.000000e+00> : vector<16x32xf32>
    %2 = tpu.matmul %0, %1, %cst {dimension_numbers = #tpu.dot_dimension_numbers<[1], [0], [0], [1], [0, 0, 1, 1], [], []>} : vector<16x32xf32>, vector<32x32xf32>, vector<16x32xf32> -> vector<16x32xf32>
    %c0_3 = arith.constant 0 : index
    %c0_4 = arith.constant 0 : index
    %3 = vector.load %arg3[%c0_3, %c0_4] : memref<1x32xf32, #tpu.memory_space<vmem>>, vector<1x32xf32>
    %4 = vector.broadcast %3 : vector<1x32xf32> to vector<16x32xf32>
    %5 = arith.addf %2, %4 : vector<16x32xf32>
    %c0_5 = arith.constant 0 : index
    %c0_6 = arith.constant 0 : index
    %6 = vector.load %arg4[%c0_5, %c0_6] : memref<16x32xf32, #tpu.memory_space<vmem>>, vector<16x32xf32>
    tpu.vector_store %arg4[%c0_5, %c0_6], %5 {strides = array<i32>} : memref<16x32xf32, #tpu.memory_space<vmem>>, vector<16x32xf32>,
    return
  }
  func.func @transform_0(%arg0: i32) -> (i32, i32) {
    %c0_i32 = arith.constant 0 : i32
    %c0_i32_0 = arith.constant 0 : i32
    return %arg0, %c0_i32 : i32, i32
  }
  func.func @transform_1(%arg0: i32) -> (i32, i32) {
    %c0_i32 = arith.constant 0 : i32
    %c0_i32_0 = arith.constant 0 : i32
    %c0_i32_1 = arith.constant 0 : i32
    return %c0_i32, %c0_i32_0 : i32, i32
  }
  func.func @transform_2(%arg0: i32) -> (i32, i32) {
    %c0_i32 = arith.constant 0 : i32
    %c0_i32_0 = arith.constant 0 : i32
    %c0_i32_1 = arith.constant 0 : i32
    return %c0_i32, %c0_i32_0 : i32, i32
  }
  func.func @transform_3(%arg0: i32) -> (i32, i32) {
    %c0_i32 = arith.constant 0 : i32
    %c0_i32_0 = arith.constant 0 : i32
    return %arg0, %c0_i32 : i32, i32
  }
}

module attributes {stable_mosaic.version = 11 : i64} {
  func.func @_attn_kernel(%arg0: i32, %arg1: i32, %arg2: memref<1x8x3x4x8xf32, #tpu.memory_space<vmem>>, %arg3: memref<1x4x9x8xf32, #tpu.memory_space<vmem>>, %arg4: memref<4x8xf32, #tpu.memory_space<vmem>>, %arg5: memref<1x1x8xi32, #tpu.memory_space<vmem>>, %arg6: memref<1x8x32xf32, #tpu.memory_space<vmem>>) attributes {dimension_semantics = [#tpu.dimension_semantics<parallel>, #tpu.dimension_semantics<parallel>], iteration_bounds = array<i64: 2, 1>, scalar_prefetch = 0 : i64, scratch_operands = 0 : i64, tpu.core_type = #tpu.core_type<tc>, window_params = [{transform_indices = @transform_0, window_bounds = array<i64: 1, 8, 3, 4, 8>}, {transform_indices = @transform_1, window_bounds = array<i64: 1, 4, 9, 8>}, {transform_indices = @transform_2, window_bounds = array<i64: 4, 8>}, {transform_indices = @transform_3, window_bounds = array<i64: 1, 1, 8>}, {transform_indices = @transform_4, window_bounds = array<i64: 1, 8, 32>}]} {
    %c0 = arith.constant 0 : index
    %c0_0 = arith.constant 0 : index
    %c0_1 = arith.constant 0 : index
    %0 = vector.load %arg5[%c0, %c0_0, %c0_1] : memref<1x1x8xi32, #tpu.memory_space<vmem>>, vector<1x1x8xi32>
    %1 = vector.shape_cast %0 : vector<1x1x8xi32> to vector<1x8xi32>
    %c0_i32 = arith.constant 0 : i32
    %2 = vector.broadcast %c0_i32 : i32 to vector<1x8xi32>
    %3 = arith.cmpi ne, %1, %2 : vector<1x8xi32>
    %c0_2 = arith.constant 0 : index
    %c0_3 = arith.constant 0 : index
    %c0_4 = arith.constant 0 : index
    %c0_5 = arith.constant 0 : index
    %c0_6 = arith.constant 0 : index
    %4 = vector.load %arg2[%c0_2, %c0_3, %c0_4, %c0_5, %c0_6] : memref<1x8x3x4x8xf32, #tpu.memory_space<vmem>>, vector<1x8x1x1x8xf32>
    %5 = vector.shape_cast %4 : vector<1x8x1x1x8xf32> to vector<8x8xf32>
    %c0_7 = arith.constant 0 : index
    %c0_8 = arith.constant 0 : index
    %c1 = arith.constant 1 : index
    %c0_9 = arith.constant 0 : index
    %c0_10 = arith.constant 0 : index
    %6 = vector.load %arg2[%c0_7, %c0_8, %c1, %c0_9, %c0_10] : memref<1x8x3x4x8xf32, #tpu.memory_space<vmem>>, vector<1x8x1x1x8xf32>
    %7 = vector.shape_cast %6 : vector<1x8x1x1x8xf32> to vector<8x8xf32>
    %c0_11 = arith.constant 0 : index
    %c0_12 = arith.constant 0 : index
    %c2 = arith.constant 2 : index
    %c0_13 = arith.constant 0 : index
    %c0_14 = arith.constant 0 : index
    %8 = vector.load %arg2[%c0_11, %c0_12, %c2, %c0_13, %c0_14] : memref<1x8x3x4x8xf32, #tpu.memory_space<vmem>>, vector<1x8x1x1x8xf32>
    %9 = vector.shape_cast %8 : vector<1x8x1x1x8xf32> to vector<8x8xf32>
    %c0_15 = arith.constant 0 : index
    %c0_16 = arith.constant 0 : index
    %10 = vector.load %arg4[%c0_15, %c0_16] : memref<4x8xf32, #tpu.memory_space<vmem>>, vector<1x8xf32>
    %11 = vector.broadcast %10 : vector<1x8xf32> to vector<8x8xf32>
    %12 = arith.addf %5, %11 : vector<8x8xf32>
    %cst = arith.constant dense<0.000000e+00> : vector<8x8xf32>
    %13 = tpu.matmul %12, %7, %cst {dimension_numbers = #tpu.dot_dimension_numbers<[1], [1], [0], [0], [0, 0, 1, 0], [], []>} : vector<8x8xf32>, vector<8x8xf32>, vector<8x8xf32> -> vector<8x8xf32>
    %c0_17 = arith.constant 0 : index
    %c0_18 = arith.constant 0 : index
    %c1_19 = arith.constant 1 : index
    %c0_20 = arith.constant 0 : index
    %14 = vector.load %arg3[%c0_17, %c0_18, %c1_19, %c0_20] : memref<1x4x9x8xf32, #tpu.memory_space<vmem>>, vector<1x1x8x8xf32>
    %15 = vector.shape_cast %14 : vector<1x1x8x8xf32> to vector<8x8xf32>
    %16 = arith.addf %13, %15 : vector<8x8xf32>
    %cst_21 = arith.constant 0.176776692 : f32
    %17 = vector.broadcast %cst_21 : f32 to vector<8x8xf32>
    %18 = arith.mulf %16, %17 : vector<8x8xf32>
    %cst_22 = arith.constant 0xFF800000 : f32
    %19 = vector.shape_cast %3 : vector<1x8xi1> to vector<1x8xi1>
    %20 = vector.broadcast %19 : vector<1x8xi1> to vector<8x8xi1>
    %21 = vector.broadcast %cst_22 : f32 to vector<8x8xf32>
    %22 = arith.select %20, %21, %18 : vector<8x8xi1>, vector<8x8xf32>
    %cst_23 = arith.constant dense<0xFF800000> : vector<8xf32>
    %23 = vector.multi_reduction <maximumf>, %22, %cst_23 [1] : vector<8x8xf32> to vector<8xf32>
    %24 = vector.shape_cast %23 : vector<8xf32> to vector<8x1xf32>
    %25 = vector.broadcast %24 : vector<8x1xf32> to vector<8x8xf32>
    %26 = arith.subf %22, %25 : vector<8x8xf32>
    %27 = math.exp %26 : vector<8x8xf32>
    %cst_24 = arith.constant dense<0.000000e+00> : vector<8xf32>
    %28 = vector.multi_reduction <add>, %27, %cst_24 [1] : vector<8x8xf32> to vector<8xf32>
    %29 = vector.shape_cast %28 : vector<8xf32> to vector<8x1xf32>
    %30 = tpu.reciprocal %29 {approx = true} : vector<8x1xf32> -> vector<8x1xf32>
    %31 = vector.broadcast %30 : vector<8x1xf32> to vector<8x8xf32>
    %32 = arith.mulf %27, %31 : vector<8x8xf32>
    %cst_25 = arith.constant dense<0.000000e+00> : vector<8x8xf32>
    %33 = tpu.matmul %32, %9, %cst_25 {dimension_numbers = #tpu.dot_dimension_numbers<[1], [0], [0], [1], [0, 0, 1, 1], [], []>} : vector<8x8xf32>, vector<8x8xf32>, vector<8x8xf32> -> vector<8x8xf32>
    %c0_26 = arith.constant 0 : index
    %c0_27 = arith.constant 0 : index
    %c0_28 = arith.constant 0 : index
    %34 = vector.load %arg6[%c0_26, %c0_27, %c0_28] : memref<1x8x32xf32, #tpu.memory_space<vmem>>, vector<1x8x8xf32>
    %35 = vector.shape_cast %34 : vector<1x8x8xf32> to vector<8x8xf32>
    %36 = vector.shape_cast %33 : vector<8x8xf32> to vector<1x8x8xf32>
    tpu.vector_store %arg6[%c0_26, %c0_27, %c0_28], %36 {strides = array<i32>} : memref<1x8x32xf32, #tpu.memory_space<vmem>>, vector<1x8x8xf32>,
    %c0_29 = arith.constant 0 : index
    %c0_30 = arith.constant 0 : index
    %c0_31 = arith.constant 0 : index
    %c1_32 = arith.constant 1 : index
    %c0_33 = arith.constant 0 : index
    %37 = vector.load %arg2[%c0_29, %c0_30, %c0_31, %c1_32, %c0_33] : memref<1x8x3x4x8xf32, #tpu.memory_space<vmem>>, vector<1x8x1x1x8xf32>
    %38 = vector.shape_cast %37 : vector<1x8x1x1x8xf32> to vector<8x8xf32>
    %c0_34 = arith.constant 0 : index
    %c0_35 = arith.constant 0 : index
    %c1_36 = arith.constant 1 : index
    %c1_37 = arith.constant 1 : index
    %c0_38 = arith.constant 0 : index
    %39 = vector.load %arg2[%c0_34, %c0_35, %c1_36, %c1_37, %c0_38] : memref<1x8x3x4x8xf32, #tpu.memory_space<vmem>>, vector<1x8x1x1x8xf32>
    %40 = vector.shape_cast %39 : vector<1x8x1x1x8xf32> to vector<8x8xf32>
    %c0_39 = arith.constant 0 : index
    %c0_40 = arith.constant 0 : index
    %c2_41 = arith.constant 2 : index
    %c1_42 = arith.constant 1 : index
    %c0_43 = arith.constant 0 : index
    %41 = vector.load %arg2[%c0_39, %c0_40, %c2_41, %c1_42, %c0_43] : memref<1x8x3x4x8xf32, #tpu.memory_space<vmem>>, vector<1x8x1x1x8xf32>
    %42 = vector.shape_cast %41 : vector<1x8x1x1x8xf32> to vector<8x8xf32>
    %c1_44 = arith.constant 1 : index
    %c0_45 = arith.constant 0 : index
    %43 = vector.load %arg4[%c1_44, %c0_45] : memref<4x8xf32, #tpu.memory_space<vmem>>, vector<1x8xf32>
    %44 = vector.broadcast %43 : vector<1x8xf32> to vector<8x8xf32>
    %45 = arith.addf %38, %44 : vector<8x8xf32>
    %cst_46 = arith.constant dense<0.000000e+00> : vector<8x8xf32>
    %46 = tpu.matmul %45, %40, %cst_46 {dimension_numbers = #tpu.dot_dimension_numbers<[1], [1], [0], [0], [0, 0, 1, 0], [], []>} : vector<8x8xf32>, vector<8x8xf32>, vector<8x8xf32> -> vector<8x8xf32>
    %c0_47 = arith.constant 0 : index
    %c1_48 = arith.constant 1 : index
    %c1_49 = arith.constant 1 : index
    %c0_50 = arith.constant 0 : index
    %47 = vector.load %arg3[%c0_47, %c1_48, %c1_49, %c0_50] : memref<1x4x9x8xf32, #tpu.memory_space<vmem>>, vector<1x1x8x8xf32>
    %48 = vector.shape_cast %47 : vector<1x1x8x8xf32> to vector<8x8xf32>
    %49 = arith.addf %46, %48 : vector<8x8xf32>
    %cst_51 = arith.constant 0.176776692 : f32
    %50 = vector.broadcast %cst_51 : f32 to vector<8x8xf32>
    %51 = arith.mulf %49, %50 : vector<8x8xf32>
    %cst_52 = arith.constant 0xFF800000 : f32
    %52 = vector.shape_cast %3 : vector<1x8xi1> to vector<1x8xi1>
    %53 = vector.broadcast %52 : vector<1x8xi1> to vector<8x8xi1>
    %54 = vector.broadcast %cst_52 : f32 to vector<8x8xf32>
    %55 = arith.select %53, %54, %51 : vector<8x8xi1>, vector<8x8xf32>
    %cst_53 = arith.constant dense<0xFF800000> : vector<8xf32>
    %56 = vector.multi_reduction <maximumf>, %55, %cst_53 [1] : vector<8x8xf32> to vector<8xf32>
    %57 = vector.shape_cast %56 : vector<8xf32> to vector<8x1xf32>
    %58 = vector.broadcast %57 : vector<8x1xf32> to vector<8x8xf32>
    %59 = arith.subf %55, %58 : vector<8x8xf32>
    %60 = math.exp %59 : vector<8x8xf32>
    %cst_54 = arith.constant dense<0.000000e+00> : vector<8xf32>
    %61 = vector.multi_reduction <add>, %60, %cst_54 [1] : vector<8x8xf32> to vector<8xf32>
    %62 = vector.shape_cast %61 : vector<8xf32> to vector<8x1xf32>
    %63 = tpu.reciprocal %62 {approx = true} : vector<8x1xf32> -> vector<8x1xf32>
    %64 = vector.broadcast %63 : vector<8x1xf32> to vector<8x8xf32>
    %65 = arith.mulf %60, %64 : vector<8x8xf32>
    %cst_55 = arith.constant dense<0.000000e+00> : vector<8x8xf32>
    %66 = tpu.matmul %65, %42, %cst_55 {dimension_numbers = #tpu.dot_dimension_numbers<[1], [0], [0], [1], [0, 0, 1, 1], [], []>} : vector<8x8xf32>, vector<8x8xf32>, vector<8x8xf32> -> vector<8x8xf32>
    %c0_56 = arith.constant 0 : index
    %c0_57 = arith.constant 0 : index
    %c8 = arith.constant 8 : index
    %67 = vector.load %arg6[%c0_56, %c0_57, %c8] : memref<1x8x32xf32, #tpu.memory_space<vmem>>, vector<1x8x8xf32>
    %68 = vector.shape_cast %67 : vector<1x8x8xf32> to vector<8x8xf32>
    %69 = vector.shape_cast %66 : vector<8x8xf32> to vector<1x8x8xf32>
    tpu.vector_store %arg6[%c0_56, %c0_57, %c8], %69 {strides = array<i32>} : memref<1x8x32xf32, #tpu.memory_space<vmem>>, vector<1x8x8xf32>,
    %c0_58 = arith.constant 0 : index
    %c0_59 = arith.constant 0 : index
    %c0_60 = arith.constant 0 : index
    %c2_61 = arith.constant 2 : index
    %c0_62 = arith.constant 0 : index
    %70 = vector.load %arg2[%c0_58, %c0_59, %c0_60, %c2_61, %c0_62] : memref<1x8x3x4x8xf32, #tpu.memory_space<vmem>>, vector<1x8x1x1x8xf32>
    %71 = vector.shape_cast %70 : vector<1x8x1x1x8xf32> to vector<8x8xf32>
    %c0_63 = arith.constant 0 : index
    %c0_64 = arith.constant 0 : index
    %c1_65 = arith.constant 1 : index
    %c2_66 = arith.constant 2 : index
    %c0_67 = arith.constant 0 : index
    %72 = vector.load %arg2[%c0_63, %c0_64, %c1_65, %c2_66, %c0_67] : memref<1x8x3x4x8xf32, #tpu.memory_space<vmem>>, vector<1x8x1x1x8xf32>
    %73 = vector.shape_cast %72 : vector<1x8x1x1x8xf32> to vector<8x8xf32>
    %c0_68 = arith.constant 0 : index
    %c0_69 = arith.constant 0 : index
    %c2_70 = arith.constant 2 : index
    %c2_71 = arith.constant 2 : index
    %c0_72 = arith.constant 0 : index
    %74 = vector.load %arg2[%c0_68, %c0_69, %c2_70, %c2_71, %c0_72] : memref<1x8x3x4x8xf32, #tpu.memory_space<vmem>>, vector<1x8x1x1x8xf32>
    %75 = vector.shape_cast %74 : vector<1x8x1x1x8xf32> to vector<8x8xf32>
    %c2_73 = arith.constant 2 : index
    %c0_74 = arith.constant 0 : index
    %76 = vector.load %arg4[%c2_73, %c0_74] : memref<4x8xf32, #tpu.memory_space<vmem>>, vector<1x8xf32>
    %77 = vector.broadcast %76 : vector<1x8xf32> to vector<8x8xf32>
    %78 = arith.addf %71, %77 : vector<8x8xf32>
    %cst_75 = arith.constant dense<0.000000e+00> : vector<8x8xf32>
    %79 = tpu.matmul %78, %73, %cst_75 {dimension_numbers = #tpu.dot_dimension_numbers<[1], [1], [0], [0], [0, 0, 1, 0], [], []>} : vector<8x8xf32>, vector<8x8xf32>, vector<8x8xf32> -> vector<8x8xf32>
    %c0_76 = arith.constant 0 : index
    %c2_77 = arith.constant 2 : index
    %c1_78 = arith.constant 1 : index
    %c0_79 = arith.constant 0 : index
    %80 = vector.load %arg3[%c0_76, %c2_77, %c1_78, %c0_79] : memref<1x4x9x8xf32, #tpu.memory_space<vmem>>, vector<1x1x8x8xf32>
    %81 = vector.shape_cast %80 : vector<1x1x8x8xf32> to vector<8x8xf32>
    %82 = arith.addf %79, %81 : vector<8x8xf32>
    %cst_80 = arith.constant 0.176776692 : f32
    %83 = vector.broadcast %cst_80 : f32 to vector<8x8xf32>
    %84 = arith.mulf %82, %83 : vector<8x8xf32>
    %cst_81 = arith.constant 0xFF800000 : f32
    %85 = vector.shape_cast %3 : vector<1x8xi1> to vector<1x8xi1>
    %86 = vector.broadcast %85 : vector<1x8xi1> to vector<8x8xi1>
    %87 = vector.broadcast %cst_81 : f32 to vector<8x8xf32>
    %88 = arith.select %86, %87, %84 : vector<8x8xi1>, vector<8x8xf32>
    %cst_82 = arith.constant dense<0xFF800000> : vector<8xf32>
    %89 = vector.multi_reduction <maximumf>, %88, %cst_82 [1] : vector<8x8xf32> to vector<8xf32>
    %90 = vector.shape_cast %89 : vector<8xf32> to vector<8x1xf32>
    %91 = vector.broadcast %90 : vector<8x1xf32> to vector<8x8xf32>
    %92 = arith.subf %88, %91 : vector<8x8xf32>
    %93 = math.exp %92 : vector<8x8xf32>
    %cst_83 = arith.constant dense<0.000000e+00> : vector<8xf32>
    %94 = vector.multi_reduction <add>, %93, %cst_83 [1] : vector<8x8xf32> to vector<8xf32>
    %95 = vector.shape_cast %94 : vector<8xf32> to vector<8x1xf32>
    %96 = tpu.reciprocal %95 {approx = true} : vector<8x1xf32> -> vector<8x1xf32>
    %97 = vector.broadcast %96 : vector<8x1xf32> to vector<8x8xf32>
    %98 = arith.mulf %93, %97 : vector<8x8xf32>
    %cst_84 = arith.constant dense<0.000000e+00> : vector<8x8xf32>
    %99 = tpu.matmul %98, %75, %cst_84 {dimension_numbers = #tpu.dot_dimension_numbers<[1], [0], [0], [1], [0, 0, 1, 1], [], []>} : vector<8x8xf32>, vector<8x8xf32>, vector<8x8xf32> -> vector<8x8xf32>
    %c0_85 = arith.constant 0 : index
    %c0_86 = arith.constant 0 : index
    %c16 = arith.constant 16 : index
    %100 = vector.load %arg6[%c0_85, %c0_86, %c16] : memref<1x8x32xf32, #tpu.memory_space<vmem>>, vector<1x8x8xf32>
    %101 = vector.shape_cast %100 : vector<1x8x8xf32> to vector<8x8xf32>
    %102 = vector.shape_cast %99 : vector<8x8xf32> to vector<1x8x8xf32>
    tpu.vector_store %arg6[%c0_85, %c0_86, %c16], %102 {strides = array<i32>} : memref<1x8x32xf32, #tpu.memory_space<vmem>>, vector<1x8x8xf32>,
    %c0_87 = arith.constant 0 : index
    %c0_88 = arith.constant 0 : index
    %c0_89 = arith.constant 0 : index
    %c3 = arith.constant 3 : index
    %c0_90 = arith.constant 0 : index
    %103 = vector.load %arg2[%c0_87, %c0_88, %c0_89, %c3, %c0_90] : memref<1x8x3x4x8xf32, #tpu.memory_space<vmem>>, vector<1x8x1x1x8xf32>
    %104 = vector.shape_cast %103 : vector<1x8x1x1x8xf32> to vector<8x8xf32>
    %c0_91 = arith.constant 0 : index
    %c0_92 = arith.constant 0 : index
    %c1_93 = arith.constant 1 : index
    %c3_94 = arith.constant 3 : index
    %c0_95 = arith.constant 0 : index
    %105 = vector.load %arg2[%c0_91, %c0_92, %c1_93, %c3_94, %c0_95] : memref<1x8x3x4x8xf32, #tpu.memory_space<vmem>>, vector<1x8x1x1x8xf32>
    %106 = vector.shape_cast %105 : vector<1x8x1x1x8xf32> to vector<8x8xf32>
    %c0_96 = arith.constant 0 : index
    %c0_97 = arith.constant 0 : index
    %c2_98 = arith.constant 2 : index
    %c3_99 = arith.constant 3 : index
    %c0_100 = arith.constant 0 : index
    %107 = vector.load %arg2[%c0_96, %c0_97, %c2_98, %c3_99, %c0_100] : memref<1x8x3x4x8xf32, #tpu.memory_space<vmem>>, vector<1x8x1x1x8xf32>
    %108 = vector.shape_cast %107 : vector<1x8x1x1x8xf32> to vector<8x8xf32>
    %c3_101 = arith.constant 3 : index
    %c0_102 = arith.constant 0 : index
    %109 = vector.load %arg4[%c3_101, %c0_102] : memref<4x8xf32, #tpu.memory_space<vmem>>, vector<1x8xf32>
    %110 = vector.broadcast %109 : vector<1x8xf32> to vector<8x8xf32>
    %111 = arith.addf %104, %110 : vector<8x8xf32>
    %cst_103 = arith.constant dense<0.000000e+00> : vector<8x8xf32>
    %112 = tpu.matmul %111, %106, %cst_103 {dimension_numbers = #tpu.dot_dimension_numbers<[1], [1], [0], [0], [0, 0, 1, 0], [], []>} : vector<8x8xf32>, vector<8x8xf32>, vector<8x8xf32> -> vector<8x8xf32>
    %c0_104 = arith.constant 0 : index
    %c3_105 = arith.constant 3 : index
    %c1_106 = arith.constant 1 : index
    %c0_107 = arith.constant 0 : index
    %113 = vector.load %arg3[%c0_104, %c3_105, %c1_106, %c0_107] : memref<1x4x9x8xf32, #tpu.memory_space<vmem>>, vector<1x1x8x8xf32>
    %114 = vector.shape_cast %113 : vector<1x1x8x8xf32> to vector<8x8xf32>
    %115 = arith.addf %112, %114 : vector<8x8xf32>
    %cst_108 = arith.constant 0.176776692 : f32
    %116 = vector.broadcast %cst_108 : f32 to vector<8x8xf32>
    %117 = arith.mulf %115, %116 : vector<8x8xf32>
    %cst_109 = arith.constant 0xFF800000 : f32
    %118 = vector.shape_cast %3 : vector<1x8xi1> to vector<1x8xi1>
    %119 = vector.broadcast %118 : vector<1x8xi1> to vector<8x8xi1>
    %120 = vector.broadcast %cst_109 : f32 to vector<8x8xf32>
    %121 = arith.select %119, %120, %117 : vector<8x8xi1>, vector<8x8xf32>
    %cst_110 = arith.constant dense<0xFF800000> : vector<8xf32>
    %122 = vector.multi_reduction <maximumf>, %121, %cst_110 [1] : vector<8x8xf32> to vector<8xf32>
    %123 = vector.shape_cast %122 : vector<8xf32> to vector<8x1xf32>
    %124 = vector.broadcast %123 : vector<8x1xf32> to vector<8x8xf32>
    %125 = arith.subf %121, %124 : vector<8x8xf32>
    %126 = math.exp %125 : vector<8x8xf32>
    %cst_111 = arith.constant dense<0.000000e+00> : vector<8xf32>
    %127 = vector.multi_reduction <add>, %126, %cst_111 [1] : vector<8x8xf32> to vector<8xf32>
    %128 = vector.shape_cast %127 : vector<8xf32> to vector<8x1xf32>
    %129 = tpu.reciprocal %128 {approx = true} : vector<8x1xf32> -> vector<8x1xf32>
    %130 = vector.broadcast %129 : vector<8x1xf32> to vector<8x8xf32>
    %131 = arith.mulf %126, %130 : vector<8x8xf32>
    %cst_112 = arith.constant dense<0.000000e+00> : vector<8x8xf32>
    %132 = tpu.matmul %131, %108, %cst_112 {dimension_numbers = #tpu.dot_dimension_numbers<[1], [0], [0], [1], [0, 0, 1, 1], [], []>} : vector<8x8xf32>, vector<8x8xf32>, vector<8x8xf32> -> vector<8x8xf32>
    %c0_113 = arith.constant 0 : index
    %c0_114 = arith.constant 0 : index
    %c24 = arith.constant 24 : index
    %133 = vector.load %arg6[%c0_113, %c0_114, %c24] : memref<1x8x32xf32, #tpu.memory_space<vmem>>, vector<1x8x8xf32>
    %134 = vector.shape_cast %133 : vector<1x8x8xf32> to vector<8x8xf32>
    %135 = vector.shape_cast %132 : vector<8x8xf32> to vector<1x8x8xf32>
    tpu.vector_store %arg6[%c0_113, %c0_114, %c24], %135 {strides = array<i32>} : memref<1x8x32xf32, #tpu.memory_space<vmem>>, vector<1x8x8xf32>,
    return
  }
  func.func @transform_0(%arg0: i32, %arg1: i32) -> (i32, i32, i32, i32, i32) {
    %c0_i32 = arith.constant 0 : i32
    %c0_i32_0 = arith.constant 0 : i32
    %c0_i32_1 = arith.constant 0 : i32
    %c0_i32_2 = arith.constant 0 : i32
    return %arg0, %c0_i32, %c0_i32_0, %arg1, %c0_i32_1 : i32, i32, i32, i32, i32
  }
  func.func @transform_1(%arg0: i32, %arg1: i32) -> (i32, i32, i32, i32) {
    %c0_i32 = arith.constant 0 : i32
    %c0_i32_0 = arith.constant 0 : i32
    %c0_i32_1 = arith.constant 0 : i32
    return %arg0, %arg1, %c0_i32, %c0_i32_0 : i32, i32, i32, i32
  }
  func.func @transform_2(%arg0: i32, %arg1: i32) -> (i32, i32) {
    %c0_i32 = arith.constant 0 : i32
    %c0_i32_0 = arith.constant 0 : i32
    return %arg1, %c0_i32 : i32, i32
  }
  func.func @transform_3(%arg0: i32, %arg1: i32) -> (i32, i32, i32) {
    %c0_i32 = arith.constant 0 : i32
    %c0_i32_0 = arith.constant 0 : i32
    %c0_i32_1 = arith.constant 0 : i32
    return %arg0, %c0_i32, %c0_i32_0 : i32, i32, i32
  }
  func.func @transform_4(%arg0: i32, %arg1: i32) -> (i32, i32, i32) {
    %c0_i32 = arith.constant 0 : i32
    %c0_i32_0 = arith.constant 0 : i32
    return %arg0, %c0_i32, %arg1 : i32, i32, i32
  }
}

</mosaic_0001>

<bundles_post_ra>
// kernel: mhsa_forward.6
= control target key start
LH: loop header
LB: loop body
LE: loop exit
PB: predicated region body
PF: predicated region fallthrough
CT: control target
= control target key end

     0   :  { %v121_v0 = vmov 0.0|0.0   ;;  %vm122_vm0 = vmmov 0   ;;  %v123_v4 = vmov 0.0   ;;  %vm16_vm1 = vcmask 261120   ;;  %s157_s1 = inlined_call_operand.vmem [shape: f32[32,32], index: 1, kind: input, shape index: {}]   ;;  %s158_s0 = inlined_call_operand.vmem [shape: f32[8,32], index: 0, kind: input, shape index: {}]   ;;  %s159_s2 = inlined_call_operand.vmem [shape: f32[8,32], index: 2, kind: output, shape index: {}]  }
   0x1   :  { %112 = vmatprep.subr.bf16.mxu0 %v121_v0  ;;  %v12_v1 = vld [vmem:[%s157_s1] sm:$0xff]  ;;  %v13_v2 = vld [vmem:[%s157_s1 + $0x8] sm:$0xff]  ;;  %v14_v3 = vld [vmem:[%s157_s1 + $0x10] sm:$0xff]  ;;  %109 = vmatprep.mubr.msk.f32.mxu0 %vm122_vm0, %v123_v4 }
   0x2   :  { %v113_v5 = vpack.c.bf16 %v13_v2, %v12_v1  ;;  %v15_v6 = vld [vmem:[%s157_s1 + $0x18] sm:$0xff]  ;;  %v11_v8 = vld [vmem:[%s158_s0] sm:$0xff] }
   0x3   :  { %v116_v7 = vpack.c.bf16 %v15_v6, %v14_v3 }
   0x4   :  { %114 = vmatpush3.bf16.msra.mxu0 %v113_v5 }
   0x5   :  { %115 = vmatprep.subr.bf16.mxu0 %v121_v0 }
   0x8   :  { %117 = vmatpush3.bf16.msra.mxu0 %v116_v7 }
   0xb   :  { %110 = vmatmul.mubr.msk.f32.vlgmr.msra.gmra.mrb[0].mxu0 %vm16_vm1, %v11_v8 }
  0xde   :  { %v86_v9 = vpop.f32.mrb[0].mxu0 }
  0xdf   :  { %90 = vst.msk [vmem:[%s159_s2] sm:$0xff] %vm16_vm1, %v86_v9  ;;  %v111_v10 = vpop.f32.mrb[1].mxu0 }

// kernel: mhsa_forward.5
= control target key start
LH: loop header
LB: loop body
LE: loop exit
PB: predicated region body
PF: predicated region fallthrough
CT: control target
= control target key end

     0   :  { %vm22_vm0 = vcmask 261120   ;;  %vm160_vm1 = vcmask 785408   ;;  %s270_s0 = inlined_call_operand.vmem [shape: f32[16,32], index: 0, kind: input, shape index: {}]   ;;  %s271_s3 = inlined_call_operand.vmem [shape: f32[32,96], index: 3, kind: input, shape index: {}]   ;;  %s272_s1 = inlined_call_operand.vmem [shape: f32[1,32], index: 1, kind: input, shape index: {}]   ;;  %s273_s2 = inlined_call_operand.vmem [shape: f32[1,32], index: 2, kind: input, shape index: {}]   ;;  %s274_s4 = inlined_call_operand.vmem [shape: f32[1,96], index: 4, kind: input, shape index: {}]   ;;  %s275_s5 = inlined_call_operand.vmem [shape: f32[16,96], index: 5, kind: output, shape index: {}]  }
   0x1   :  { %v20_v0 = vld [vmem:[%s270_s0] sm:$0xff]  ;;  %v21_v1 = vld [vmem:[%s270_s0 + $0x8] sm:$0xff]  ;;  %v70_v16 = vld [vmem:[%s271_s3 + $0x10] sm:$0xff] }
   0x2   :  { %v23_v2 = vsel %vm22_vm0, %v20_v0, 0.0  ;;  %v26_v3 = vsel %vm22_vm0, %v21_v1, 0.0  ;;  %v68_v14 = vld [vmem:[%s271_s3] sm:$0xff]  ;;  %v69_v15 = vld [vmem:[%s271_s3 + $0x8] sm:$0xff]  ;;  %v71_v18 = vld [vmem:[%s271_s3 + $0x18] sm:$0xff] }
   0x3   :  { %24 = vadd.xlane.f32.xlu0 %v23_v2  ;;  %v189_v17 = vpack.c.bf16 %v69_v15, %v68_v14  ;;  %v193_v19 = vpack.c.bf16 %v71_v18, %v70_v16  ;;  %v167_v27 = vld [vmem:[%s272_s1] ss:$0 sm:$0xff] }
   0x4   :  { %v168_v29 = vld [vmem:[%s273_s2] ss:$0 sm:$0xff] }
   0x5   :  { %190 = vmatprep.subr.bf16.mxu0 %v189_v17  ;;  %v169_v36 = vld [vmem:[%s274_s4] ss:$0 sm:$0xff] }
   0x6   :  { %192 = vmatpush3.bf16.msra.mxu0 %v189_v17 }
   0x7   :  { %27 = vadd.xlane.f32.xlu0 %v26_v3  ;;  %194 = vmatprep.subr.bf16.mxu0 %v193_v19 }
   0xa   :  { %196 = vmatpush3.bf16.msra.mxu0 %v193_v19 }
  0x90   :  { %v25_v4 = vpop.xlane.xlu0 %24 }
  0x91   :  { %v30_v5 = vmul.f32 0.03125, %v25_v4 }
  0x93   :  { %v32_v6 = vsub.f32 %v20_v0, %v30_v5 }
  0x94   :  { %v28_v7 = vpop.xlane.xlu0 %27 }
  0x95   :  { %v31_v8 = vmul.f32 0.03125, %v28_v7  ;;  %v34_v9 = vmul.f32 %v32_v6, %v32_v6 }
  0x97   :  { %v33_v10 = vsub.f32 %v21_v1, %v31_v8  ;;  %v36_v11 = vsel %vm22_vm0, %v34_v9, 0.0 }
  0x98   :  { %37 = vadd.xlane.f32.xlu1 %v36_v11 }
  0x99   :  { %v35_v12 = vmul.f32 %v33_v10, %v33_v10 }
  0x9b   :  { %v39_v13 = vsel %vm22_vm0, %v35_v12, 0.0 }
  0x9c   :  { %40 = vadd.xlane.f32.xlu1 %v39_v13 }
 0x125   :  { %v38_v20 = vpop.xlane.xlu1 %37 }
 0x126   :  { %v42_v21 = vmul.f32 0.03125, %v38_v20 }
 0x128   :  { %v44_v22 = vadd.f32 1e-05, %v42_v21 }
 0x129   :  { %v41_v23 = vpop.xlane.xlu1 %40 }
 0x12a   :  { %197 = vrsqrt.f32 %v44_v22  ;;  %v43_v24 = vmul.f32 0.03125, %v41_v23 }
 0x12c   :  { %v45_v25 = vadd.f32 1e-05, %v43_v24 }
 0x12e   :  { %199 = vrsqrt.f32 %v45_v25 }
 0x134   :  { %v198_v26 = vpop.eup %197 }
 0x135   :  { %v48_v28 = vmul.f32 %v198_v26, %v32_v6 }
 0x137   :  { %v57_v30 = vmul.f32 %v167_v27, %v48_v28 }
 0x138   :  { %v200_v31 = vpop.eup %199 }
 0x139   :  { %v49_v32 = vmul.f32 %v200_v31, %v33_v10  ;;  %v66_v33 = vadd.f32 %v168_v29, %v57_v30 }
 0x13b   :  { %v58_v34 = vmul.f32 %v167_v27, %v49_v32  ;;  %186 = vmatprep.mubr.msk.f32.mxu0 %vm22_vm0, %v66_v33 }
 0x13d   :  { %v67_v35 = vadd.f32 %v168_v29, %v58_v34 }
 0x13f   :  { %187 = vmatmul.mubr.msk.f32.vlgmr.msra.gmra.mrb[0].mxu0 %vm22_vm0, %v67_v35 }
 0x212   :  { %v188_v37 = vpop.f32.mrb[0].mxu0 }
 0x213   :  { %v157_v38 = vadd.f32 %v188_v37, %v169_v36  ;;  %v151_v39 = vpop.f32.mrb[1].mxu0 }
 0x214   :  { %v152_v40 = vadd.f32 %v169_v36, %v151_v39 }
 0x215   :  { %162 = vst.msk [vmem:[%s275_s5 + $0x8] sm:$0xff] %vm160_vm1, %v157_v38 }
 0x216   :  { %161 = vst.msk [vmem:[%s275_s5] sm:$0xff] %vm160_vm1, %v152_v40 }

// kernel: mhsa_forward.7
= control target key start
LH: loop header
LB: loop body
LE: loop exit
PB: predicated region body
PF: predicated region fallthrough
CT: control target
= control target key end

     0   :  { %s1237_s12 = smov 0   ;;  %s1239_s13 = smov 0   ;;  %s1543_s0 = inlined_call_operand.vmem [shape: f32[2,8,3,4,8], index: 0, kind: input, shape index: {}]   ;;  %s1544_s1 = inlined_call_operand.vmem [shape: f32[9,4,8], index: 1, kind: input, shape index: {}]   ;;  %s1545_s2 = inlined_call_operand.vmem [shape: f32[4,8], index: 2, kind: input, shape index: {}]   ;;  %s1546_s3 = inlined_call_operand.vmem [shape: f32[2,4,8,9], index: 3, kind: output, shape index: {}]  }
   0x1   :  { %s1241_s14 = smov 0   ;;  %s1243_s15 = smov 0  }
   0x2   :  { %s1245_s16 = smov 0  }
   0x3 LB: > { %s25_s17 = sadd.s32 1, %s1208_s15  ;;  %p41_p1 = scmp.ne.s32.totalorder %s1200_s13, %s1196_s12  ;;  %s1212_s16 = sphi %s1245_s16, %s13_s16   ;;  %s1208_s15 = sphi %s1243_s15, %s1552_s15   ;;  %s1204_s14 = sphi %s1241_s14, %s1551_s14   ;;  %s1200_s13 = sphi %s1239_s13, %s1550_s13   ;;  %s1196_s12 = sphi %s1237_s12, %s1549_s12  }
   0x4   : > { %p27_p0 = scmp.ge.s32.totalorder %s25_s17, 2  ;;  %p42_p2 = scmp.eq.s32.totalorder %s1212_s16, 0 }
   0x5   : > { %s34_s19 = sadd.s32 1, %s1200_s13  ;;  %p1045_p5 = scmp.ge.s32.totalorder %s1212_s16, 2 }
   0x6   : > { %s1554_s17 = smov (%p27_p0, %s25_s17), 0  ;;  %p43_p3 = por %p42_p2, %p41_p1 }
   0x7   : > { %s29_s18 = ssub.s32 %s1208_s15, %s1554_s17  ;;  %161 = sbr.rel (%p1045_p5) target bundleno = 24 (0x18), region = 24 }
   0x8   : > { %p32_p4 = scmp.eq.s32.totalorder %s29_s18, 0 }
   0xa   : > { %s1272_s20 = scalar_select %p32_p4, %s1200_s13, %s34_s19  }
   0xe   : > { %164 = sbr.rel (!%p43_p3) target bundleno = 24 (0x18), region = 28  ;;  %s166_s21 = sand.u32 (%p43_p3), 1, %s1200_s13  }
   0xf   : > { %s1130_s22 = smul.u32 (%p43_p3), 96, %s1208_s15  ;;  %s1046_s23 = sshll.u32 (%p43_p3), %s166_s21, 5 }
  0x10   : > { %s168_s27 = scalar_lea.vmem (%p43_p3), [#allocation2], %s1046_s23 }
  0x11   : > { %s172_s26 = scalar_lea.vmem (%p43_p3), %s1543_s0, %s1130_s22 }
  0x12   : > { %v188_v0 = vld [vmem:[%s172_s26] sm:$0xf] (%p43_p3)  ;;  %v190_v1 = vld [vmem:[%s172_s26 + $0xc] sm:$0xf] (%p43_p3)  ;;  %v192_v2 = vld [vmem:[%s172_s26 + $0x18] sm:$0xf] (%p43_p3) }
  0x13   : > { %189 = vst [vmem:[%s168_s27] sm:$0xf] (%p43_p3), %v188_v0  ;;  %191 = vst [vmem:[%s168_s27 + $0x4] sm:$0xf] (%p43_p3), %v190_v1  ;;  %v194_v3 = vld [vmem:[%s172_s26 + $0x24] sm:$0xf] (%p43_p3) }
  0x14   : > { %193 = vst [vmem:[%s168_s27 + $0x8] sm:$0xf] (%p43_p3), %v192_v2  ;;  %v196_v4 = vld [vmem:[%s172_s26 + $0x30] sm:$0xf] (%p43_p3)  ;;  %v198_v5 = vld [vmem:[%s172_s26 + $0x3c] sm:$0xf] (%p43_p3) }
  0x15   : > { %195 = vst [vmem:[%s168_s27 + $0xc] sm:$0xf] %v194_v3  ;;  %197 = vst [vmem:[%s168_s27 + $0x10] sm:$0xf] %v196_v4  ;;  %v200_v6 = vld [vmem:[%s172_s26 + $0x48] sm:$0xf] }
  0x16   : > { %199 = vst [vmem:[%s168_s27 + $0x14] sm:$0xf] %v198_v5  ;;  %v202_v7 = vld [vmem:[%s172_s26 + $0x54] sm:$0xf]  ;;  %201 = vst [vmem:[%s168_s27 + $0x18] sm:$0xf] %v200_v6 }
  0x17   : > { %203 = vst [vmem:[%s168_s27 + $0x1c] sm:$0xf] %v202_v7 }
  0x18 PF: > { %p1048_p6 = scmp.ge.s32.totalorder %s1212_s16, 1  ;;  %p241_p7 = scmp.lt.s32.totalorder %s1212_s16, 3 }
  0x1a   : > { %p242_p8 = pnand %p1048_p6, %p241_p7 }
  0x1b   : > { %v1214_v8 = vmov (!%p242_p8), 0.0|0.0   ;;  %v309_v9 = vld [vmem:[%s1544_s1] sm:$0x1] (!%p242_p8)  ;;  %v310_v10 = vld [vmem:[%s1544_s1 + $0x4] sm:$0x1] (!%p242_p8)  ;;  %vm340_vm0 = vcmask (!%p242_p8), 1041409  }
  0x1c   : > { %245 = sbr.rel (%p242_p8) target bundleno = 288 (0x120), region = 69  ;;  %1114 = vmatprep.subr.bf16.mxu0 (!%p242_p8), %v1214_v8  ;;  %1118 = vmatprep.subr.bf16.mxu1 (!%p242_p8), %v1214_v8  ;;  %v311_v11 = vld [vmem:[%s1544_s1 + $0x8] sm:$0x1] (!%p242_p8)  ;;  %v312_v12 = vld [vmem:[%s1544_s1 + $0xc] sm:$0x1] (!%p242_p8)  ;;  %vm343_vm1 = vcmask (!%p242_p8), 1042434  }
  0x1d   : > { %v313_v13 = vld [vmem:[%s1544_s1 + $0x10] sm:$0x1] (!%p242_p8)  ;;  %v314_v14 = vld [vmem:[%s1544_s1 + $0x14] sm:$0x1] (!%p242_p8)  ;;  %v315_v15 = vld [vmem:[%s1544_s1 + $0x18] sm:$0x1] (!%p242_p8) }
  0x1e   : > { %vm346_vm2 = vcmask (!%p242_p8), 1043459   ;;  %vm349_vm3 = vcmask (!%p242_p8), 1044484   ;;  %vm352_vm4 = vcmask (!%p242_p8), 1045509   ;;  %v316_v16 = vld [vmem:[%s1544_s1 + $0x1c] sm:$0x1] (!%p242_p8)  ;;  %vm355_vm5 = vcmask (!%p242_p8), 1046534  }
  0x1f   : > { %vm358_vm6 = vcmask (!%p242_p8), 1047559   ;;  %v369_v17 = vrot.slane (!%p242_p8), %v310_v10, 7  ;;  %v371_v18 = vrot.slane (!%p242_p8), %v311_v11, 6  ;;  %v373_v19 = vrot.slane (!%p242_p8), %v312_v12, 5  ;;  %v470_v21 = vld [vmem:[%s1544_s1 + $0x1] sm:$0x1] (!%p242_p8) }
  0x20   : > { %v375_v20 = vrot.slane (!%p242_p8), %v313_v13, 4  ;;  %v471_v22 = vld [vmem:[%s1544_s1 + $0x5] sm:$0x1] (!%p242_p8)  ;;  %v377_v24 = vrot.slane (!%p242_p8), %v314_v14, 3  ;;  %v379_v25 = vrot.slane (!%p242_p8), %v315_v15, 2  ;;  %v381_v34 = vrot.slane (!%p242_p8), %v316_v16, 1 }
  0x21   : > { %v370_v23 = vsel (!%p242_p8), %vm340_vm0, %v369_v17, %v309_v9  ;;  %v472_v26 = vld [vmem:[%s1544_s1 + $0x9] sm:$0x1] (!%p242_p8)  ;;  %v473_v27 = vld [vmem:[%s1544_s1 + $0xd] sm:$0x1] (!%p242_p8)  ;;  %v474_v29 = vld [vmem:[%s1544_s1 + $0x11] sm:$0x1] (!%p242_p8) }
  0x22   : > { %v372_v28 = vsel (!%p242_p8), %vm343_vm1, %v371_v18, %v370_v23  ;;  %v475_v30 = vld [vmem:[%s1544_s1 + $0x15] sm:$0x1] (!%p242_p8)  ;;  %v523_v31 = vrot.slane (!%p242_p8), %v471_v22, 7  ;;  %v525_v32 = vrot.slane (!%p242_p8), %v472_v26, 6  ;;  %vm383_vm7 = vcmask (!%p242_p8), 64512   ;;  %s248_s19 = sand.u32 (!%p242_p8), 1, %s1196_s12  }
  0x23   : > { %v374_v33 = vsel %vm346_vm2, %v373_v19, %v372_v28  ;;  %v476_v35 = vld [vmem:[%s1544_s1 + $0x19] sm:$0x1]  ;;  %v477_v36 = vld [vmem:[%s1544_s1 + $0x1d] sm:$0x1]  ;;  %v527_v39 = vrot.slane %v473_v27, 5  ;;  %v529_v40 = vrot.slane %v474_v29, 4  ;;  %vm1354_vm8 = vmpackc.low %vm383_vm7, %vm383_vm7 }
  0x24   : > { %v376_v37 = vsel %vm349_vm3, %v375_v20, %v374_v33  ;;  %v524_v38 = vsel %vm340_vm0, %v523_v31, %v470_v21  ;;  %v317_v41 = vld [vmem:[%s1544_s1 + $0x20] sm:$0x1]  ;;  %v531_v44 = vrot.slane %v475_v30, 3  ;;  %v533_v45 = vrot.slane %v476_v35, 2  ;;  %s1049_s23 = sshll.u32 %s248_s19, 5  ;;  %p292_p9 = scmp.lt.s32.totalorder %s1204_s14, 1 }
  0x25   : > { %v378_v42 = vsel %vm352_vm4, %v377_v24, %v376_v37  ;;  %v526_v43 = vsel %vm343_vm1, %v525_v32, %v524_v38  ;;  %v478_v47 = vld [vmem:[%s1544_s1 + $0x21] sm:$0x1]  ;;  %v535_v49 = vrot.slane %v477_v36, 1  ;;  %v1052_v50 = vld [vmem:[%s1545_s2] ss:$0 sm:$0xff]  ;;  %s1359_s27 = scalar_lea.vmem [#allocation2], %s1049_s23 }
  0x26   : > { %v380_v46 = vsel %vm355_vm5, %v379_v25, %v378_v42  ;;  %v528_v48 = vsel %vm346_vm2, %v527_v39, %v526_v43  ;;  %v301_v54 = vld [vmem:[%s1359_s27] sm:$0x1]  ;;  %v302_v55 = vld [vmem:[%s1359_s27 + $0x4] sm:$0x1]  ;;  %vm1215_vm9 = vmmov 0   ;;  %v1216_v58 = vmov 0.0  }
  0x27   : > { %v382_v51 = vsel %vm358_vm6, %v381_v34, %v380_v46  ;;  %v530_v53 = vsel %vm349_vm3, %v529_v40, %v528_v48  ;;  %1090 = vmatprep.mubr.msk.f32.mxu0 %vm1215_vm9, %v1216_v58  ;;  %1097 = vmatprep.mubr.msk.f32.mxu1 %vm1215_vm9, %v1216_v58  ;;  %v303_v59 = vld [vmem:[%s1359_s27 + $0x8] sm:$0x1]  ;;  %v304_v60 = vld [vmem:[%s1359_s27 + $0xc] sm:$0x1]  ;;  %v305_v61 = vld [vmem:[%s1359_s27 + $0x10] sm:$0x1]  ;;  %v323_v62 = vadd.f32 %v1052_v50, %v301_v54 }
  0x28   : > { %v1115_v56 = vpack.c.bf16 %v317_v41, %v382_v51  ;;  %v532_v57 = vsel %vm352_vm4, %v531_v44, %v530_v53  ;;  %v1056_v63 = vld [vmem:[%s1545_s2 + $0x1] ss:$0 sm:$0xff]  ;;  %v306_v1 = vld [vmem:[%s1359_s27 + $0x14] sm:$0x1]  ;;  %v307_v2 = vld [vmem:[%s1359_s27 + $0x18] sm:$0x1]  ;;  %v324_v4 = vadd.f32 %v1052_v50, %v302_v55  ;;  %v325_v5 = vadd.f32 %v1052_v50, %v303_v59 }
  0x29   : > { %v534_v0 = vsel %vm355_vm5, %v533_v45, %v532_v57  ;;  %v308_v3 = vld [vmem:[%s1359_s27 + $0x1c] sm:$0x1]  ;;  %v326_v6 = vadd.f32 %v1052_v50, %v304_v60  ;;  %v327_v9 = vadd.f32 %v1052_v50, %v305_v61  ;;  %v328_v10 = vadd.f32 %v1052_v50, %v306_v1  ;;  %v462_v12 = vld [vmem:[%s1359_s27 + $0x1] sm:$0x1]  ;;  %v463_v13 = vld [vmem:[%s1359_s27 + $0x5] sm:$0x1] }
  0x2a   : > { %1117 = vmatpush3.bf16.xpose.msk.msra.mxu0 %vm1354_vm8, %v1115_v56  ;;  %v536_v7 = vsel %vm358_vm6, %v535_v49, %v534_v0  ;;  %v329_v11 = vadd.f32 %v1052_v50, %v307_v2  ;;  %v464_v14 = vld [vmem:[%s1359_s27 + $0x9] sm:$0x1]  ;;  %v330_v16 = vadd.f32 %v1052_v50, %v308_v3  ;;  %v339_v17 = vrot.slane %v324_v4, 7  ;;  %v465_v19 = vld [vmem:[%s1359_s27 + $0xd] sm:$0x1]  ;;  %s1556_s14 = smov (!%p292_p9, %s1204_s14), 1 }
  0x2b   : > { %v1119_v15 = vpack.c.bf16 %v478_v47, %v536_v7  ;;  %v342_v18 = vrot.slane %v325_v5, 6  ;;  %v466_v20 = vld [vmem:[%s1359_s27 + $0x11] sm:$0x1]  ;;  %1122 = vmatprep.subr.bf16.mxu0 %v1214_v8  ;;  %v345_v21 = vrot.slane %v326_v6, 5  ;;  %v348_v22 = vrot.slane %v327_v9, 4 }
  0x2c   : > { %v351_v23 = vrot.slane %v328_v10, 3  ;;  %v354_v24 = vrot.slane %v329_v11, 2  ;;  %v467_v25 = vld [vmem:[%s1359_s27 + $0x15] sm:$0x1]  ;;  %v341_v26 = vsel %vm340_vm0, %v339_v17, %v323_v62  ;;  %v357_v27 = vrot.slane %v330_v16, 1 }
  0x2d   : > { %1121 = vmatpush3.bf16.xpose.msk.msra.mxu1 %vm1354_vm8, %v1119_v15  ;;  %v468_v28 = vld [vmem:[%s1359_s27 + $0x19] sm:$0x1]  ;;  %v469_v29 = vld [vmem:[%s1359_s27 + $0x1d] sm:$0x1]  ;;  %v484_v30 = vadd.f32 %v1056_v63, %v462_v12  ;;  %v485_v31 = vadd.f32 %v1056_v63, %v463_v13  ;;  %v344_v32 = vsel %vm343_vm1, %v342_v18, %v341_v26  ;;  %v486_v33 = vadd.f32 %v1056_v63, %v464_v14  ;;  %v623_v40 = vld [vmem:[%s1544_s1 + $0x2] sm:$0x1] }
  0x2e   : > { %v487_v34 = vadd.f32 %v1056_v63, %v465_v19  ;;  %v488_v35 = vadd.f32 %v1056_v63, %v466_v20  ;;  %1126 = vmatprep.subr.bf16.mxu1 %v1214_v8  ;;  %v347_v36 = vsel %vm346_vm2, %v345_v21, %v344_v32  ;;  %v489_v37 = vadd.f32 %v1056_v63, %v467_v25  ;;  %v624_v41 = vld [vmem:[%s1544_s1 + $0x6] sm:$0x1]  ;;  %v625_v42 = vld [vmem:[%s1544_s1 + $0xa] sm:$0x1]  ;;  %v626_v8 = vld [vmem:[%s1544_s1 + $0xe] sm:$0x1] }
  0x2f   : > { %v490_v38 = vadd.f32 %v1056_v63, %v468_v28  ;;  %v491_v39 = vadd.f32 %v1056_v63, %v469_v29  ;;  %v350_v43 = vsel %vm349_vm3, %v348_v22, %v347_v36  ;;  %v500_v44 = vrot.slane %v485_v31, 7  ;;  %v627_v47 = vld [vmem:[%s1544_s1 + $0x12] sm:$0x1]  ;;  %v628_v53 = vld [vmem:[%s1544_s1 + $0x16] sm:$0x1] }
  0x30   : > { %v502_v45 = vrot.slane %v486_v33, 6  ;;  %v504_v46 = vrot.slane %v487_v34, 5  ;;  %v353_v48 = vsel %vm352_vm4, %v351_v23, %v350_v43  ;;  %v506_v49 = vrot.slane %v488_v35, 4  ;;  %v629_v57 = vld [vmem:[%s1544_s1 + $0x1a] sm:$0x1] }
  0x31   : > { %v508_v50 = vrot.slane %v489_v37, 3  ;;  %v510_v51 = vrot.slane %v490_v38, 2  ;;  %v356_v54 = vsel %vm355_vm5, %v354_v24, %v353_v48  ;;  %v501_v55 = vsel %vm340_vm0, %v500_v44, %v484_v30  ;;  %v630_v59 = vld [vmem:[%s1544_s1 + $0x1e] sm:$0x1]  ;;  %v777_v1 = vld [vmem:[%s1544_s1 + $0x7] sm:$0x1] }
  0x32   : > { %v512_v56 = vrot.slane %v491_v39, 1  ;;  %v676_v60 = vrot.slane %v624_v41, 7  ;;  %v359_v61 = vsel %vm358_vm6, %v357_v27, %v356_v54  ;;  %v503_v62 = vsel %vm343_vm1, %v502_v45, %v501_v55  ;;  %v778_v2 = vld [vmem:[%s1544_s1 + $0xb] sm:$0x1]  ;;  %v779_v7 = vld [vmem:[%s1544_s1 + $0xf] sm:$0x1] }
  0x33   : > { %v678_v63 = vrot.slane %v625_v42, 6  ;;  %v680_v0 = vrot.slane %v626_v8, 5  ;;  %1091 = vmatmul.mubr.msk.f32.vlgmr.msra.gmra.mrb[0].mxu0 %vm383_vm7, %v359_v61  ;;  %v505_v3 = vsel %vm346_vm2, %v504_v46, %v503_v62  ;;  %v682_v5 = vrot.slane %v627_v47, 4  ;;  %v780_v9 = vld [vmem:[%s1544_s1 + $0x13] sm:$0x1] }
  0x34   : > { %v677_v4 = vsel %vm340_vm0, %v676_v60, %v623_v40  ;;  %v684_v6 = vrot.slane %v628_v53, 3  ;;  %v507_v10 = vsel %vm349_vm3, %v506_v49, %v505_v3  ;;  %v686_v12 = vrot.slane %v629_v57, 2  ;;  %v776_v14 = vld [vmem:[%s1544_s1 + $0x3] sm:$0x1]  ;;  %v781_v15 = vld [vmem:[%s1544_s1 + $0x17] sm:$0x1]  ;;  %1104 = vmatprep.mubr.msk.f32.mxu0 %vm1215_vm9, %v1216_v58 }
  0x35   : > { %v679_v11 = vsel %vm343_vm1, %v678_v63, %v677_v4  ;;  %v688_v13 = vrot.slane %v630_v59, 1  ;;  %v509_v16 = vsel %vm352_vm4, %v508_v50, %v507_v10  ;;  %v631_v17 = vld [vmem:[%s1544_s1 + $0x22] sm:$0x1]  ;;  %v782_v19 = vld [vmem:[%s1544_s1 + $0x1b] sm:$0x1]  ;;  %v829_v21 = vrot.slane %v777_v1, 7 }
  0x36   : > { %v681_v18 = vsel %vm346_vm2, %v680_v0, %v679_v11  ;;  %v783_v20 = vld [vmem:[%s1544_s1 + $0x1f] sm:$0x1]  ;;  %v831_v22 = vrot.slane %v778_v2, 6  ;;  %v511_v23 = vsel %vm355_vm5, %v510_v51, %v509_v16  ;;  %v833_v25 = vrot.slane %v779_v7, 5  ;;  %v615_v27 = vld [vmem:[%s1359_s27 + $0x2] sm:$0x1] }
  0x37   : > { %v683_v24 = vsel %vm349_vm3, %v682_v5, %v681_v18  ;;  %v835_v26 = vrot.slane %v780_v9, 4  ;;  %v616_v28 = vld [vmem:[%s1359_s27 + $0x6] sm:$0x1]  ;;  %v513_v29 = vsel %vm358_vm6, %v512_v56, %v511_v23  ;;  %v830_v31 = vsel %vm340_vm0, %v829_v21, %v776_v14  ;;  %v617_v33 = vld [vmem:[%s1359_s27 + $0xa] sm:$0x1] }
  0x38   : > { %v685_v30 = vsel %vm352_vm4, %v684_v6, %v683_v24  ;;  %v837_v32 = vrot.slane %v781_v15, 3  ;;  %v618_v34 = vld [vmem:[%s1359_s27 + $0xe] sm:$0x1]  ;;  %1098 = vmatmul.mubr.msk.f32.vlgmr.msra.gmra.mrb[0].mxu1 %vm383_vm7, %v513_v29  ;;  %v832_v36 = vsel %vm343_vm1, %v831_v22, %v830_v31  ;;  %v839_v37 = vrot.slane %v782_v19, 2  ;;  %v619_v39 = vld [vmem:[%s1359_s27 + $0x12] sm:$0x1] }
  0x39   : > { %v687_v35 = vsel %vm355_vm5, %v686_v12, %v685_v30  ;;  %v841_v38 = vrot.slane %v783_v20, 1  ;;  %v620_v40 = vld [vmem:[%s1359_s27 + $0x16] sm:$0x1]  ;;  %v834_v42 = vsel %vm346_vm2, %v833_v25, %v832_v36  ;;  %1111 = vmatprep.mubr.msk.f32.mxu1 %vm1215_vm9, %v1216_v58  ;;  %v621_v8 = vld [vmem:[%s1359_s27 + $0x1a] sm:$0x1]  ;;  %vm460_vm10 = vcmask 72704  }
  0x3a   : > { %v689_v41 = vsel %vm358_vm6, %v688_v13, %v687_v35  ;;  %v622_v43 = vld [vmem:[%s1359_s27 + $0x1e] sm:$0x1]  ;;  %v1061_v44 = vld [vmem:[%s1545_s2 + $0x2] ss:$0 sm:$0xff]  ;;  %v784_v46 = vld [vmem:[%s1544_s1 + $0x23] sm:$0x1]  ;;  %v836_v47 = vsel %vm349_vm3, %v835_v26, %v834_v42 }
  0x3b   : > { %v1123_v45 = vpack.c.bf16 %v631_v17, %v689_v41  ;;  %v637_v48 = vadd.f32 %v1061_v44, %v615_v27  ;;  %v638_v49 = vadd.f32 %v1061_v44, %v616_v28  ;;  %v768_v50 = vld [vmem:[%s1359_s27 + $0x3] sm:$0x1]  ;;  %v838_v58 = vsel %vm352_vm4, %v837_v32, %v836_v47  ;;  %v769_v55 = vld [vmem:[%s1359_s27 + $0x7] sm:$0x1]  ;;  %v770_v56 = vld [vmem:[%s1359_s27 + $0xb] sm:$0x1] }
  0x3c   : > { %v639_v51 = vadd.f32 %v1061_v44, %v617_v33  ;;  %v640_v53 = vadd.f32 %v1061_v44, %v618_v34  ;;  %v641_v54 = vadd.f32 %v1061_v44, %v619_v39  ;;  %v771_v57 = vld [vmem:[%s1359_s27 + $0xf] sm:$0x1]  ;;  %v840_v59 = vsel %vm355_vm5, %v839_v37, %v838_v58  ;;  %v772_v63 = vld [vmem:[%s1359_s27 + $0x13] sm:$0x1]  ;;  %v773_v0 = vld [vmem:[%s1359_s27 + $0x17] sm:$0x1] }
  0x3d   : > { %1125 = vmatpush3.bf16.xpose.msk.msra.mxu0 %vm1354_vm8, %v1123_v45  ;;  %v642_v60 = vadd.f32 %v1061_v44, %v620_v40  ;;  %v643_v61 = vadd.f32 %v1061_v44, %v621_v8  ;;  %v644_v62 = vadd.f32 %v1061_v44, %v622_v43  ;;  %v1066_v1 = vld [vmem:[%s1545_s2 + $0x3] ss:$0 sm:$0xff]  ;;  %v842_v2 = vsel %vm358_vm6, %v841_v38, %v840_v59  ;;  %v774_v6 = vld [vmem:[%s1359_s27 + $0x1b] sm:$0x1]  ;;  %v775_v12 = vld [vmem:[%s1359_s27 + $0x1f] sm:$0x1] }
  0x3e   : > { %v653_v3 = vrot.slane %v638_v49, 7  ;;  %v655_v4 = vrot.slane %v639_v51, 6  ;;  %v657_v5 = vrot.slane %v640_v53, 5  ;;  %v1127_v7 = vpack.c.bf16 %v784_v46, %v842_v2  ;;  %s1073_s27 = sshll.u32 %s1556_s14, 5 }
  0x3f   : > { %v659_v9 = vrot.slane %v641_v54, 4  ;;  %v661_v10 = vrot.slane %v642_v60, 3  ;;  %v663_v11 = vrot.slane %v643_v61, 2  ;;  %v665_v14 = vrot.slane %v644_v62, 1  ;;  %s299_s5 = scalar_lea.vmem %s1546_s3, %s1073_s27 }
  0x40   : > { %v654_v13 = vsel %vm340_vm0, %v653_v3, %v637_v48  ;;  %v790_v15 = vadd.f32 %v1066_v1, %v768_v50  ;;  %v791_v16 = vadd.f32 %v1066_v1, %v769_v55  ;;  %1129 = vmatpush3.bf16.xpose.msk.msra.mxu1 %vm1354_vm8, %v1127_v7  ;;  %v792_v18 = vadd.f32 %v1066_v1, %v770_v56 }
  0x41   : > { %v656_v17 = vsel %vm343_vm1, %v655_v4, %v654_v13  ;;  %v793_v19 = vadd.f32 %v1066_v1, %v771_v57  ;;  %v794_v20 = vadd.f32 %v1066_v1, %v772_v63  ;;  %v795_v22 = vadd.f32 %v1066_v1, %v773_v0 }
  0x42   : > { %v658_v21 = vsel %vm346_vm2, %v657_v5, %v656_v17  ;;  %v796_v23 = vadd.f32 %v1066_v1, %v774_v6  ;;  %v797_v24 = vadd.f32 %v1066_v1, %v775_v12  ;;  %v806_v26 = vrot.slane %v791_v16, 7 }
  0x43   : > { %v660_v25 = vsel %vm349_vm3, %v659_v9, %v658_v21  ;;  %v808_v27 = vrot.slane %v792_v18, 6  ;;  %v810_v28 = vrot.slane %v793_v19, 5  ;;  %v812_v52 = vrot.slane %v794_v20, 4 }
  0x44   : > { %v662_v29 = vsel %vm352_vm4, %v661_v10, %v660_v25  ;;  %v807_v31 = vsel %vm340_vm0, %v806_v26, %v790_v15  ;;  %v814_v32 = vrot.slane %v795_v22, 3  ;;  %v816_v35 = vrot.slane %v796_v23, 2 }
  0x45   : > { %v664_v30 = vsel %vm355_vm5, %v663_v11, %v662_v29  ;;  %v809_v34 = vsel %vm343_vm1, %v808_v27, %v807_v31  ;;  %v818_v37 = vrot.slane %v797_v24, 1 }
  0x46   : > { %v666_v33 = vsel %vm358_vm6, %v665_v14, %v664_v30  ;;  %v811_v36 = vsel %vm346_vm2, %v810_v28, %v809_v34 }
  0x47   : > { %1105 = vmatmul.mubr.msk.f32.vlgmr.msra.gmra.mrb[2].mxu0 %vm383_vm7, %v666_v33  ;;  %v813_v38 = vsel %vm349_vm3, %v812_v52, %v811_v36 }
  0x48   : > { %v815_v39 = vsel %vm352_vm4, %v814_v32, %v813_v38 }
  0x49   : > { %v817_v40 = vsel %vm355_vm5, %v816_v35, %v815_v39 }
  0x4a   : > { %v819_v41 = vsel %vm358_vm6, %v818_v37, %v817_v40 }
  0x4b   : > { %1112 = vmatmul.mubr.msk.f32.vlgmr.msra.gmra.mrb[2].mxu1 %vm383_vm7, %v819_v41 }
 0x106   : > { %v456_v42 = vpop.f32.mrb[0].mxu0 }
 0x107   : > { %461 = vst.msk [vmem:[%s299_s5] sm:$0xff] %vm460_vm10, %v456_v42  ;;  %v1092_v8 = vpop.f32.mrb[1].mxu0 }
 0x10b   : > { %v609_v43 = vpop.f32.mrb[0].mxu1 }
 0x10c   : > { %1060 = vst.msk [vmem:[%s299_s5 + $0x8] sm:$0xff] %vm460_vm10, %v609_v43  ;;  %v1099_v44 = vpop.f32.mrb[1].mxu1 }
 0x11a   : > { %v762_v45 = vpop.f32.mrb[2].mxu0 }
 0x11b   : > { %1065 = vst.msk [vmem:[%s299_s5 + $0x10] sm:$0xff] %vm460_vm10, %v762_v45  ;;  %v1106_v46 = vpop.f32.mrb[3].mxu0 }
 0x11e   : > { %v915_v47 = vpop.f32.mrb[2].mxu1 }
 0x11f   : > { %1070 = vst.msk [vmem:[%s299_s5 + $0x18] sm:$0xff] %vm460_vm10, %v915_v47  ;;  %v1113_v48 = vpop.f32.mrb[3].mxu1 }
 0x120 PF: > { %s13_s16 = sadd.s32 1, %s1212_s16   ;;  %s1549_s12 = smov %s1200_s13 }
 0x121   : > { %p10_p10 = scmp.ge.s32.totalorder %s13_s16, 4   ;;  %s1550_s13 = smov %s1272_s20 }
 0x122   : > { %s1551_s14 = smov %s1208_s15  ;;  %s1552_s15 = smov %s1554_s17 }
 0x123   :  { %12 = sbr.rel (!%p10_p10) target bundleno = 3 (0x3), region = 117 }

// kernel: mhsa_forward.9
= control target key start
LH: loop header
LB: loop body
LE: loop exit
PB: predicated region body
PF: predicated region fallthrough
CT: control target
= control target key end

     0   :  { %vm28_vm0 = vcmask 261120   ;;  %s243_s0 = inlined_call_operand.vmem [shape: f32[16,32], index: 0, kind: input, shape index: {}]   ;;  %s244_s1 = inlined_call_operand.vmem [shape: f32[32,32], index: 1, kind: input, shape index: {}]   ;;  %s245_s2 = inlined_call_operand.vmem [shape: f32[1,32], index: 2, kind: input, shape index: {}]   ;;  %s246_s3 = inlined_call_operand.hbm [shape: f32[16,32], index: 3, kind: output, shape index: {}]  }
   0x1   :  { %v17_v0 = vld [vmem:[%s244_s1] sm:$0xff]  ;;  %v18_v1 = vld [vmem:[%s244_s1 + $0x8] sm:$0xff]  ;;  %v19_v2 = vld [vmem:[%s244_s1 + $0x10] sm:$0xff] }
   0x2   :  { %v148_v3 = vpack.c.bf16 %v18_v1, %v17_v0  ;;  %v20_v4 = vld [vmem:[%s244_s1 + $0x18] sm:$0xff]  ;;  %v15_v5 = vld [vmem:[%s243_s0] sm:$0xff] }
   0x3   :  { %v152_v6 = vpack.c.bf16 %v20_v4, %v19_v2  ;;  %145 = vmatprep.mubr.msk.f32.mxu0 %vm28_vm0, %v15_v5 }
   0x4   :  { %8 = vsyncpa [#allocation3], 0  ;;  %149 = vmatprep.subr.bf16.mxu0 %v148_v3  ;;  %v16_v7 = vld [vmem:[%s243_s0 + $0x8] sm:$0xff]  ;;  %v128_v8 = vld [vmem:[%s245_s2] ss:$0 sm:$0xff]  ;;  %s183_s25 = smov [#allocation2]  }
   0x5   :  { %151 = vmatpush3.bf16.msra.mxu0 %v148_v3  ;;  %s117_s26 = sshll.u32 %s183_s25, 4  ;;  %s118_s26 = int_to_ptr.vmem [resolvable:$true] %s117_s26 }
   0x6   :  { %153 = vmatprep.subr.bf16.mxu0 %v152_v6  ;;  %s159_s27 = scalar_lea.vmem %s118_s26, 256  ;;  %p164_p1 = scmp.lt.s32.totalorder %s118_s26, %s118_s26 }
   0x7   :  { %p160_p0 = scmp.ne.s32.totalorder %s118_s26, %s159_s27  ;;  %p165_p2 = scmp.lt.s32.totalorder %s159_s27, %s159_s27 }
   0x9   :  { %155 = vmatpush3.bf16.msra.mxu0 %v152_v6  ;;  %p166_p3 = por %p165_p2, %p164_p1 }
   0xb   :  { %p167_p4 = pnand %p166_p3, %p160_p0 }
   0xc   :  { %146 = vmatmul.mubr.msk.f32.vlgmr.msra.gmra.mrb[0].mxu0 %vm28_vm0, %v16_v7 }
  0xdf   :  { %v147_v9 = vpop.f32.mrb[0].mxu0 }
  0xe0   :  { %v107_v10 = vadd.f32 %v147_v9, %v128_v8  ;;  %v101_v11 = vpop.f32.mrb[1].mxu0 }
  0xe1   :  { %v102_v12 = vadd.f32 %v128_v8, %v101_v11 }
  0xe2   :  { %111 = vst.msk [vmem:[#allocation2 + $0x8] sm:$0xff] %vm28_vm0, %v107_v10 }
  0xe3   :  { %110 = vst.msk [vmem:[#allocation2] sm:$0xff] %vm28_vm0, %v102_v12 }
  0xe4   :  { %170 = shalt.err (!%p167_p4)
}
  0xe5   :  { %s171_s28 = scalar_lea.hbm %s246_s3, 256 }
  0xe6   :  { %p172_p5 = scmp.ne.s32.totalorder %s246_s3, %s171_s28  ;;  %p175_p6 = scmp.lt.u32.totalorder %s171_s28, %s246_s3 }
  0xe8   :  { %p177_p7 = pnand %p175_p6, %p172_p5 }
  0xea   :  { %180 = shalt.err (!%p177_p7)
}
  0xeb   :  { %s184_s6 = smov 128   ;;  %s185_s7 = smov 8  }
  0xec   :  { %123 = dma.vmem_to_hbm [thread:$0]  %s118_s26, 256, %s246_s3, [#allocation3], %s184_s6, %s184_s6, %s185_s7  }
  0xed   :  { %181 = dma.done.wait [#allocation3], 256  }
  0xee   :  { %182 = vsyncadd [#allocation3], 4294967040 }
  0xef   :  { %127 = vsyncpa [#allocation3], 1 }

// kernel: mhsa_forward.8
= control target key start
LH: loop header
LB: loop body
LE: loop exit
PB: predicated region body
PF: predicated region fallthrough
CT: control target
= control target key end

     0   :  { %s1774_s15 = smov 0   ;;  %s1776_s16 = smov 0   ;;  %s2129_s0 = inlined_call_operand.vmem [shape: f32[2,8,3,4,8], index: 0, kind: input, shape index: {}]   ;;  %s2130_s1 = inlined_call_operand.vmem [shape: f32[2,4,9,8], index: 1, kind: input, shape index: {}]   ;;  %s2131_s2 = inlined_call_operand.vmem [shape: f32[4,8], index: 2, kind: input, shape index: {}]   ;;  %s2132_s3 = inlined_call_operand.vmem [shape: s32[2,1,8], index: 3, kind: input, shape index: {}]   ;;  %s2133_s4 = inlined_call_operand.vmem [shape: f32[2,8,32], index: 4, kind: output, shape index: {}]  }
   0x1   :  { %s1778_s17 = smov 0  }
   0x2 LB: > { %s26_s18 = sadd.s32 1, %s1737_s16  ;;  %p1525_p0 = scmp.ge.s32.totalorder %s1741_s17, 1  ;;  %s1741_s17 = sphi %s1778_s17, %s14_s17   ;;  %s1737_s16 = sphi %s1776_s16, %s2135_s16   ;;  %s1733_s15 = sphi %s1774_s15, %s2134_s15  }
   0x3   : > { %p28_p1 = scmp.ge.s32.totalorder %s26_s18, 2  ;;  %p216_p2 = scmp.lt.s32.totalorder %s1741_s17, 3 }
   0x5   : > { %s2137_s18 = smov (%p28_p1, %s26_s18), 0  ;;  %p217_p3 = pnand %p1525_p0, %p216_p2 }
   0x6   : > { %p264_p4 = scmp.lt.s32.totalorder (!%p217_p3), %s1733_s15, 1  ;;  %v1743_v0 = vmov (!%p217_p3), 0.0   ;;  %vm1744_vm0 = vmmov (!%p217_p3), 0   ;;  %vm348_vm1 = vcmask (!%p217_p3), 1041409   ;;  %vm351_vm2 = vcmask (!%p217_p3), 1042434   ;;  %s1747_s20 = smov (!%p217_p3), 16  }
   0x7   : > { %220 = sbr.rel (%p217_p3) target bundleno = 1436 (0x59c), region = 36  ;;  %1632 = vmatprep.subr.mxu0 (!%p217_p3), %v1743_v0  ;;  %1637 = vmatprep.subr.mxu1 (!%p217_p3), %v1743_v0  ;;  %vm354_vm3 = vcmask (!%p217_p3), 1043459   ;;  %vm357_vm4 = vcmask (!%p217_p3), 1044484   ;;  %vm360_vm5 = vcmask (!%p217_p3), 1045509   ;;  %vm363_vm6 = vcmask (!%p217_p3), 1046534   ;;  %s1748_s21 = smov (!%p217_p3), 24  }
   0x8   : > { %1634 = vmatprep.mubr.msk.f32.mxu0 (!%p217_p3), %vm1744_vm0, %v1743_v0  ;;  %1639 = vmatprep.mubr.msk.f32.mxu1 (!%p217_p3), %vm1744_vm0, %v1743_v0  ;;  %vm366_vm7 = vcmask (!%p217_p3), 1047559   ;;  %v1546_v4 = vld [vmem:[%s2131_s2] ss:$0 sm:$0xff] (!%p217_p3)  ;;  %vm390_vm8 = vcmask (!%p217_p3), 64512   ;;  %v467_v54 = vlaneseq (!%p217_p3)  ;;  %v1745_v58 = vmov (!%p217_p3), 0  }
   0x9   : > { %vm851_vm11 = vcmask (!%p217_p3), 130112   ;;  %vm1123_vm12 = vcmask (!%p217_p3), 195712   ;;  %vm1395_vm13 = vcmask (!%p217_p3), 261312  }
   0xa   : > { %v468_v56 = vshrl.u32 (!%p217_p3), %v467_v54, 7  ;;  %v1902_v54 = vld [vmem:[%s2131_s2 + $0x2] ss:$0 sm:$0xff] (!%p217_p3) }
   0xc   : > { %v469_v57 = vsub.s32 (!%p217_p3), 0, %v468_v56 }
   0xe   : > { %s2139_s15 = smov (!%p264_p4, %s1733_s15), 1 }
   0xf   : > { %s1672_s19 = smul.u32 96, %s2139_s15  ;;  %s289_s27 = scalar_lea.vmem %s2132_s3, %s2139_s15 }
  0x10   : > { %v297_v55 = vld [vmem:[%s289_s27] sm:$0x1]  ;;  %s1615_s28 = sshll.u32 %s2139_s15, 6  ;;  %s1529_s12 = sshll.u32 %s2139_s15, 3 }
  0x11   : > { %s1804_s22 = scalar_lea.vmem %s2129_s0, %s1672_s19  ;;  %vm298_vm9 = vcmp.ne.s32.totalorder %v297_v55, 0  ;;  %s1852_s5 = scalar_lea.vmem %s2130_s1, %s1615_s28 }
  0x12   : > { %v1530_v1 = vld [vmem:[%s1804_s22 + $0x4] sm:$0x1]  ;;  %v1531_v2 = vld [vmem:[%s1804_s22 + $0x10] sm:$0x1]  ;;  %v1532_v3 = vld [vmem:[%s1804_s22 + $0x1c] sm:$0x1]  ;;  %s2032_s19 = scalar_lea.vmem %s2133_s4, %s1529_s12 }
  0x13   : > { %v1533_v5 = vld [vmem:[%s1804_s22 + $0x28] sm:$0x1]  ;;  %v1534_v6 = vld [vmem:[%s1804_s22 + $0x34] sm:$0x1]  ;;  %v1535_v7 = vld [vmem:[%s1804_s22 + $0x40] sm:$0x1] }
  0x14   : > { %v1536_v8 = vld [vmem:[%s1804_s22 + $0x4c] sm:$0x1]  ;;  %v1537_v9 = vld [vmem:[%s1804_s22 + $0x58] sm:$0x1]  ;;  %v376_v10 = vrot.slane %v1531_v2, 7  ;;  %v378_v11 = vrot.slane %v1532_v3, 6 }
  0x15   : > { %v380_v12 = vrot.slane %v1533_v5, 5  ;;  %v382_v13 = vrot.slane %v1534_v6, 4  ;;  %v384_v14 = vrot.slane %v1535_v7, 3  ;;  %v299_v15 = vld [vmem:[%s1804_s22] sm:$0x1]  ;;  %v386_v17 = vrot.slane %v1536_v8, 2 }
  0x16   : > { %v377_v16 = vsel %vm348_vm1, %v376_v10, %v1530_v1  ;;  %v388_v18 = vrot.slane %v1537_v9, 1  ;;  %v300_v19 = vld [vmem:[%s1804_s22 + $0xc] sm:$0x1]  ;;  %v301_v20 = vld [vmem:[%s1804_s22 + $0x18] sm:$0x1]  ;;  %v330_v25 = vadd.f32 %v1546_v4, %v299_v15  ;;  %v466_v59 = vsel %vm298_vm9, 1, %v1745_v58 }
  0x17   : > { %v379_v21 = vsel %vm351_vm2, %v378_v11, %v377_v16  ;;  %v302_v22 = vld [vmem:[%s1804_s22 + $0x24] sm:$0x1]  ;;  %v303_v23 = vld [vmem:[%s1804_s22 + $0x30] sm:$0x1]  ;;  %v304_v24 = vld [vmem:[%s1804_s22 + $0x3c] sm:$0x1]  ;;  %v331_v26 = vadd.f32 %v1546_v4, %v300_v19  ;;  %v332_v27 = vadd.f32 %v1546_v4, %v301_v20  ;;  %v1855_v61 = vrot.slane %v466_v59, %v469_v57 }
  0x18   : > { %v381_v28 = vsel %vm354_vm3, %v380_v12, %v379_v21  ;;  %v305_v29 = vld [vmem:[%s1804_s22 + $0x48] sm:$0x1]  ;;  %v306_v30 = vld [vmem:[%s1804_s22 + $0x54] sm:$0x1]  ;;  %v333_v31 = vadd.f32 %v1546_v4, %v302_v22  ;;  %v334_v32 = vadd.f32 %v1546_v4, %v303_v23  ;;  %v335_v33 = vadd.f32 %v1546_v4, %v304_v24  ;;  %v1540_v11 = vld [vmem:[%s1804_s22 + $0x20] sm:$0x1] }
  0x19   : > { %v383_v34 = vsel %vm357_vm4, %v382_v13, %v381_v28  ;;  %v336_v35 = vadd.f32 %v1546_v4, %v305_v29  ;;  %v337_v36 = vadd.f32 %v1546_v4, %v306_v30  ;;  %v347_v37 = vrot.slane %v331_v26, 7  ;;  %v338_v60 = vld [vmem:[%s1852_s5 + $0x1] sm:$0xff]  ;;  %v1539_v10 = vld [vmem:[%s1804_s22 + $0x14] sm:$0x1]  ;;  %v1542_v16 = vld [vmem:[%s1804_s22 + $0x38] sm:$0x1] }
  0x1a   : > { %v385_v38 = vsel %vm360_vm5, %v384_v14, %v383_v34  ;;  %v350_v39 = vrot.slane %v332_v27, 6  ;;  %v353_v40 = vrot.slane %v333_v31, 5  ;;  %v356_v41 = vrot.slane %v334_v32, 4  ;;  %v1538_v13 = vld [vmem:[%s1804_s22 + $0x8] sm:$0x1]  ;;  %s1746_s15 = smov 8  }
  0x1b   : > { %v387_v42 = vsel %vm363_vm6, %v386_v17, %v385_v38  ;;  %v349_v43 = vsel %vm348_vm1, %v347_v37, %v330_v25  ;;  %v359_v44 = vrot.slane %v335_v33, 3  ;;  %v362_v47 = vrot.slane %v336_v35, 2  ;;  %v1541_v14 = vld [vmem:[%s1804_s22 + $0x2c] sm:$0x1]  ;;  %v1543_v17 = vld [vmem:[%s1804_s22 + $0x44] sm:$0x1] }
  0x1c   : > { %v389_v45 = vsel %vm366_vm7, %v388_v18, %v387_v42  ;;  %v352_v46 = vsel %vm351_vm2, %v350_v39, %v349_v43  ;;  %v365_v49 = vrot.slane %v337_v36, 1  ;;  %vm471_vm10 = vcmp.eq.s32.totalorder %v1855_v61, 1  ;;  %v1544_v18 = vld [vmem:[%s1804_s22 + $0x50] sm:$0x1]  ;;  %v1545_v20 = vld [vmem:[%s1804_s22 + $0x5c] sm:$0x1] }
  0x1d   : > { %1633 = vmatpush3.xpose.msk.msra.mxu0 %vm390_vm8, %v389_v45  ;;  %v355_v48 = vsel %vm354_vm3, %v353_v40, %v352_v46  ;;  %v492_v12 = vrot.slane %v1539_v10, 7  ;;  %v494_v15 = vrot.slane %v1540_v11, 6  ;;  %v496_v22 = vrot.slane %v1541_v14, 5  ;;  %v1551_v32 = vld [vmem:[%s1804_s22 + $0x11] sm:$0x1] }
  0x1e   : > { %v358_v50 = vsel %vm357_vm4, %v356_v41, %v355_v48  ;;  %1647 = vmatprep.subr.mxu0 %v1743_v0  ;;  %v498_v23 = vrot.slane %v1542_v16, 4  ;;  %v500_v24 = vrot.slane %v1543_v17, 3  ;;  %v502_v25 = vrot.slane %v1544_v18, 2  ;;  %v1552_v33 = vld [vmem:[%s1804_s22 + $0x1d] sm:$0x1] }
  0x1f   : > { %v361_v51 = vsel %vm360_vm5, %v359_v44, %v358_v50  ;;  %v493_v19 = vsel %vm348_vm1, %v492_v12, %v1538_v13  ;;  %v504_v27 = vrot.slane %v1545_v20, 1  ;;  %v650_v34 = vrot.slane %v1551_v32, 7  ;;  %v1550_v35 = vld [vmem:[%s1804_s22 + $0x5] sm:$0x1]  ;;  %v1553_v36 = vld [vmem:[%s1804_s22 + $0x29] sm:$0x1] }
  0x20   : > { %v364_v52 = vsel %vm363_vm6, %v362_v47, %v361_v51  ;;  %v495_v21 = vsel %vm351_vm2, %v494_v15, %v493_v19  ;;  %v652_v37 = vrot.slane %v1552_v33, 6  ;;  %v1554_v39 = vld [vmem:[%s1804_s22 + $0x35] sm:$0x1]  ;;  %v654_v40 = vrot.slane %v1553_v36, 5  ;;  %v582_v42 = vld [vmem:[%s1804_s22 + $0xd] sm:$0x1] }
  0x21   : > { %v367_v53 = vsel %vm366_vm7, %v365_v49, %v364_v52  ;;  %v497_v26 = vsel %vm354_vm3, %v496_v22, %v495_v21  ;;  %v651_v38 = vsel %vm348_vm1, %v650_v34, %v1550_v35  ;;  %v1555_v43 = vld [vmem:[%s1804_s22 + $0x41] sm:$0x1]  ;;  %v656_v44 = vrot.slane %v1554_v39, 4  ;;  %v1556_v47 = vld [vmem:[%s1804_s22 + $0x4d] sm:$0x1] }
  0x22   : > { %1635 = vmatmul.mubr.msk.f32.vlgmr.msra.gmra.mrb[0].mxu0 %vm390_vm8, %v367_v53  ;;  %v499_v28 = vsel %vm357_vm4, %v498_v23, %v497_v26  ;;  %v653_v41 = vsel %vm351_vm2, %v652_v37, %v651_v38  ;;  %v1566_v45 = vld [vmem:[%s2131_s2 + $0x1] ss:$0 sm:$0xff]  ;;  %v658_v48 = vrot.slane %v1555_v43, 3  ;;  %v583_v52 = vld [vmem:[%s1804_s22 + $0x19] sm:$0x1]  ;;  %v660_v56 = vrot.slane %v1556_v47, 2 }
  0x23   : > { %1649 = vmatprep.mubr.msk.f32.mxu0 %vm1744_vm0, %v1743_v0  ;;  %v501_v29 = vsel %vm360_vm5, %v500_v24, %v499_v28  ;;  %v655_v46 = vsel %vm354_vm3, %v654_v40, %v653_v41  ;;  %v611_v49 = vadd.f32 %v1566_v45, %v582_v42  ;;  %v581_v51 = vld [vmem:[%s1804_s22 + $0x1] sm:$0x1]  ;;  %v854_v53 = vld [vmem:[%s1804_s22 + $0xe] sm:$0x1]  ;;  %v1557_v55 = vld [vmem:[%s1804_s22 + $0x59] sm:$0x1] }
  0x24   : > { %v503_v30 = vsel %vm363_vm6, %v502_v25, %v501_v29  ;;  %v657_v50 = vsel %vm357_vm4, %v656_v44, %v655_v46  ;;  %v1572_v57 = vld [vmem:[%s1804_s22 + $0x12] sm:$0x1]  ;;  %v610_v59 = vadd.f32 %v1566_v45, %v581_v51  ;;  %v855_v10 = vld [vmem:[%s1804_s22 + $0x1a] sm:$0x1]  ;;  %v1571_v12 = vld [vmem:[%s1804_s22 + $0x6] sm:$0x1] }
  0x25   : > { %v505_v31 = vsel %vm366_vm7, %v504_v27, %v503_v30  ;;  %v659_v58 = vsel %vm360_vm5, %v658_v48, %v657_v50  ;;  %v1126_v13 = vld [vmem:[%s1804_s22 + $0xf] sm:$0x1]  ;;  %v1921_v14 = vld [vmem:[%s2131_s2 + $0x3] ss:$0 sm:$0xff]  ;;  %v588_v15 = vld [vmem:[%s1804_s22 + $0x55] sm:$0x1]  ;;  %v884_v24 = vadd.f32 %v1902_v54, %v855_v10 }
  0x26   : > { %1638 = vmatpush3.msra.mxu1 %v505_v31  ;;  %v661_v11 = vsel %vm363_vm6, %v660_v56, %v659_v58  ;;  %v1593_v19 = vld [vmem:[%s1804_s22 + $0x13] sm:$0x1]  ;;  %v1574_v20 = vld [vmem:[%s1804_s22 + $0x2a] sm:$0x1]  ;;  %v856_v22 = vld [vmem:[%s1804_s22 + $0x26] sm:$0x1]  ;;  %v1155_v30 = vadd.f32 %v1921_v14, %v1126_v13  ;;  %v1940_v33 = vadd.f32 %v1566_v45, %v588_v15 }
  0x27   : > { %1642 = vmatprep.subr.mxu1 %v1743_v0  ;;  %v1127_v29 = vld [vmem:[%s1804_s22 + $0x1b] sm:$0x1]  ;;  %v1594_v34 = vld [vmem:[%s1804_s22 + $0x1f] sm:$0x1]  ;;  %v1194_v35 = vrot.slane %v1593_v19, 7  ;;  %v926_v39 = vrot.slane %v1574_v20, 5  ;;  %v885_v41 = vadd.f32 %v1902_v54, %v856_v22 }
  0x28   : > { %v1125_v36 = vld [vmem:[%s1804_s22 + $0x3] sm:$0x1]  ;;  %v857_v40 = vld [vmem:[%s1804_s22 + $0x32] sm:$0x1]  ;;  %v1592_v42 = vld [vmem:[%s1804_s22 + $0x7] sm:$0x1] }
  0x29   : > { %v1575_v44 = vld [vmem:[%s1804_s22 + $0x36] sm:$0x1]  ;;  %v902_v47 = vrot.slane %v884_v24, 6  ;;  %v1128_v48 = vld [vmem:[%s1804_s22 + $0x27] sm:$0x1]  ;;  %v1196_v51 = vrot.slane %v1594_v34, 6  ;;  %v886_v58 = vadd.f32 %v1902_v54, %v857_v40 }
  0x2a   : > { %v1595_v50 = vld [vmem:[%s1804_s22 + $0x2b] sm:$0x1]  ;;  %v1130_v20 = vld [vmem:[%s1804_s22 + $0x3f] sm:$0x1]  ;;  %v1597_v24 = vld [vmem:[%s1804_s22 + $0x43] sm:$0x1] }
  0x2b   : > { %v906_v19 = vrot.slane %v886_v58, 4 }
  0xf5   : > { %v461_v62 = vpop.f32.mrb[0].mxu0 }
  0xf6   : > { %v462_v63 = vadd.f32 %v461_v62, %v338_v60  ;;  %v1636_v1 = vpop.f32.mrb[1].mxu0  ;;  %v612_v60 = vadd.f32 %v1566_v45, %v583_v52  ;;  %v628_v62 = vrot.slane %v611_v49, 7  ;;  %v1156_v49 = vadd.f32 %v1921_v14, %v1127_v29  ;;  %v1578_v29 = vld [vmem:[%s1804_s22 + $0x5a] sm:$0x1] }
  0xf7   : > { %v585_v1 = vld [vmem:[%s1804_s22 + $0x31] sm:$0x1]  ;;  %v1154_v52 = vadd.f32 %v1921_v14, %v1125_v36 }
  0xf8   : > { %v465_v2 = vmul.f32 0.17677669, %v462_v63  ;;  %v584_v63 = vld [vmem:[%s1804_s22 + $0x25] sm:$0x1]  ;;  %v629_v17 = vsel %vm348_vm1, %v628_v62, %v610_v59  ;;  %v630_v18 = vrot.slane %v612_v60, 6  ;;  %v614_v27 = vadd.f32 %v1566_v45, %v585_v1 }
  0xf9   : > { %v613_v16 = vadd.f32 %v1566_v45, %v584_v63  ;;  %v1195_v59 = vsel %vm348_vm1, %v1194_v35, %v1592_v42  ;;  %v1576_v62 = vld [vmem:[%s1804_s22 + $0x42] sm:$0x1]  ;;  %v928_v63 = vrot.slane %v1575_v44, 4  ;;  %v904_v1 = vrot.slane %v885_v41, 5  ;;  %v1598_v41 = vld [vmem:[%s1804_s22 + $0x4f] sm:$0x1] }
  0xfa   : > { %v472_v3 = vsel %vm471_vm10, -inf, %v465_v2  ;;  %v1573_v2 = vld [vmem:[%s1804_s22 + $0x1e] sm:$0x1]  ;;  %v631_v37 = vsel %vm351_vm2, %v630_v18, %v629_v17  ;;  %v1197_v13 = vsel %vm351_vm2, %v1196_v51, %v1195_v59  ;;  %v1577_v17 = vld [vmem:[%s1804_s22 + $0x4e] sm:$0x1]  ;;  %v930_v18 = vrot.slane %v1576_v62, 3 }
  0xfb   : > { %v473_v4 = vsel %vm390_vm8, %v472_v3, -inf  ;;  %v924_v21 = vrot.slane %v1573_v2, 6  ;;  %v632_v38 = vrot.slane %v613_v16, 5  ;;  %v1129_v2 = vld [vmem:[%s1804_s22 + $0x33] sm:$0x1]  ;;  %v932_v36 = vrot.slane %v1577_v17, 2 }
  0xfc   : > { %474 = vmax.xlane.f32.xlu0 %v473_v4  ;;  %v662_v4 = vrot.slane %v1557_v55, 1  ;;  %v634_v55 = vrot.slane %v614_v27, 4  ;;  %v1202_v42 = vrot.slane %v1597_v24, 3  ;;  %v1204_v58 = vrot.slane %v1598_v41, 2 }
  0xfd   : > { %v633_v60 = vsel %vm354_vm3, %v632_v38, %v631_v37  ;;  %v1131_v38 = vld [vmem:[%s1804_s22 + $0x4b] sm:$0x1] }
  0xfe   : > { %v1931_v26 = vsel %vm366_vm7, %v662_v4, %v661_v11  ;;  %v859_v11 = vld [vmem:[%s1804_s22 + $0x4a] sm:$0x1]  ;;  %v635_v16 = vsel %vm357_vm4, %v634_v55, %v633_v60 }
 0x189   : > { %v475_v5 = vpop.xlane.xlu0 %474 }
 0x18a   : > { %v476_v6 = vsub.f32 %v472_v3, %v475_v5  ;;  %v883_v3 = vadd.f32 %v1902_v54, %v854_v53  ;;  %v586_v5 = vld [vmem:[%s1804_s22 + $0x3d] sm:$0x1]  ;;  %v1172_v53 = vrot.slane %v1155_v30, 7  ;;  %v860_v30 = vld [vmem:[%s1804_s22 + $0x56] sm:$0x1] }
 0x18b   : > { %v1936_v31 = vadd.f32 %v1566_v45, %v586_v5 }
 0x18c   : > { %v477_v7 = vmul.f32 1.442695, %v476_v6  ;;  %v587_v6 = vld [vmem:[%s1804_s22 + $0x49] sm:$0x1]  ;;  %v900_v25 = vrot.slane %v883_v3, 7  ;;  %v1157_v3 = vadd.f32 %v1921_v14, %v1128_v48  ;;  %v1173_v15 = vsel %vm348_vm1, %v1172_v53, %v1154_v52 }
 0x18d   : > { %v1938_v32 = vadd.f32 %v1566_v45, %v587_v6  ;;  %v636_v56 = vrot.slane %v1936_v31, 3  ;;  %v1596_v6 = vld [vmem:[%s1804_s22 + $0x37] sm:$0x1]  ;;  %v888_v31 = vadd.f32 %v1902_v54, %v859_v11  ;;  %v1160_v53 = vadd.f32 %v1921_v14, %v1131_v38 }
 0x18e   : > { %1703 = vpow2.f32 %v477_v7  ;;  %v922_v7 = vrot.slane %v1572_v57, 7  ;;  %v858_v57 = vld [vmem:[%s1804_s22 + $0x3e] sm:$0x1]  ;;  %v1176_v27 = vrot.slane %v1157_v3, 5  ;;  %v1132_v52 = vld [vmem:[%s1804_s22 + $0x57] sm:$0x1] }
 0x18f   : > { %v638_v10 = vrot.slane %v1938_v32, 2  ;;  %v637_v35 = vsel %vm360_vm5, %v636_v56, %v635_v16  ;;  %v910_v51 = vrot.slane %v888_v31, 2 }
 0x190   : > { %v923_v28 = vsel %vm348_vm1, %v922_v7, %v1571_v12  ;;  %v1198_v7 = vrot.slane %v1595_v50, 5  ;;  %v887_v12 = vadd.f32 %v1902_v54, %v858_v57  ;;  %v1599_v57 = vld [vmem:[%s1804_s22 + $0x5b] sm:$0x1] }
 0x191   : > { %v925_v46 = vsel %vm351_vm2, %v924_v21, %v923_v28  ;;  %v1158_v21 = vadd.f32 %v1921_v14, %v1129_v2  ;;  %v640_v28 = vrot.slane %v1940_v33, 1  ;;  %v639_v50 = vsel %vm363_vm6, %v638_v10, %v637_v35 }
 0x192   : > { %v927_v4 = vsel %vm354_vm3, %v926_v39, %v925_v46  ;;  %v1199_v32 = vsel %vm354_vm3, %v1198_v7, %v1197_v13  ;;  %v908_v37 = vrot.slane %v887_v12, 3  ;;  %v1159_v39 = vadd.f32 %v1921_v14, %v1130_v20  ;;  %v1567_v13 = vld [vmem:[%s1852_s5 + $0x11] sm:$0xff] }
 0x193   : > { %v929_v22 = vsel %vm357_vm4, %v928_v63, %v927_v4  ;;  %v934_v46 = vrot.slane %v1578_v29, 1  ;;  %v1161_v63 = vadd.f32 %v1921_v14, %v1132_v52  ;;  %v1206_v3 = vrot.slane %v1599_v57, 1  ;;  %v1562_v57 = vld [vmem:[%s1804_s22 + $0x39] sm:$0x1] }
 0x194   : > { %v931_v40 = vsel %vm360_vm5, %v930_v18, %v929_v22  ;;  %v1180_v59 = vrot.slane %v1159_v39, 3  ;;  %v1182_v4 = vrot.slane %v1160_v53, 2  ;;  %v1588_v18 = vld [vmem:[%s1852_s5 + $0x21] sm:$0xff]  ;;  %v1558_v53 = vld [vmem:[%s1804_s22 + $0x9] sm:$0x1] }
 0x195   : > { %v933_v55 = vsel %vm363_vm6, %v932_v36, %v931_v40 }
 0x198   : > { %v1861_v8 = vpop.eup %1703 }
 0x199   : > { %v479_v9 = vsel %vm390_vm8, %v1861_v8, 0.0 }
 0x19a   : > { %480 = vadd.xlane.f32.xlu0 %v479_v9  ;;  %v853_v9 = vld [vmem:[%s1804_s22 + $0x2] sm:$0x1] }
 0x19b   : > { %v882_v23 = vadd.f32 %v1902_v54, %v853_v9  ;;  %v1174_v9 = vrot.slane %v1156_v49, 6 }
 0x19d   : > { %v901_v45 = vsel %vm348_vm1, %v900_v25, %v882_v23  ;;  %v1200_v25 = vrot.slane %v1596_v6, 4  ;;  %v1175_v34 = vsel %vm351_vm2, %v1174_v9, %v1173_v15  ;;  %v1184_v6 = vrot.slane %v1161_v63, 1 }
 0x19e   : > { %v903_v5 = vsel %vm351_vm2, %v902_v47, %v901_v45  ;;  %v889_v45 = vadd.f32 %v1902_v54, %v860_v30  ;;  %v1177_v48 = vsel %vm354_vm3, %v1176_v27, %v1175_v34 }
 0x19f   : > { %v905_v23 = vsel %vm354_vm3, %v904_v1, %v903_v5  ;;  %v1201_v47 = vsel %vm357_vm4, %v1200_v25, %v1199_v32  ;;  %v935_v1 = vsel %vm366_vm7, %v934_v46, %v933_v55  ;;  %v1609_v25 = vld [vmem:[%s1852_s5 + $0x31] sm:$0xff]  ;;  %v1561_v55 = vld [vmem:[%s1804_s22 + $0x2d] sm:$0x1] }
 0x1a0   : > { %v907_v33 = vsel %vm357_vm4, %v906_v19, %v905_v23  ;;  %v1203_v54 = vsel %vm360_vm5, %v1202_v42, %v1201_v47  ;;  %v912_v62 = vrot.slane %v889_v45, 1 }
 0x1a1   : > { %v909_v56 = vsel %vm360_vm5, %v908_v37, %v907_v33  ;;  %v1205_v5 = vsel %vm363_vm6, %v1204_v58, %v1203_v54  ;;  %v1563_v54 = vld [vmem:[%s1804_s22 + $0x45] sm:$0x1] }
 0x1a2   : > { %v911_v2 = vsel %vm363_vm6, %v910_v51, %v909_v56  ;;  %v1207_v7 = vsel %vm366_vm7, %v1206_v3, %v1205_v5  ;;  %v1560_v51 = vld [vmem:[%s1804_s22 + $0x21] sm:$0x1] }
 0x1a3   : > { %v913_v14 = vsel %vm366_vm7, %v912_v62, %v911_v2  ;;  %v761_v56 = vrot.slane %v1560_v51, 6  ;;  %v1564_v62 = vld [vmem:[%s1804_s22 + $0x51] sm:$0x1]  ;;  %v1565_v2 = vld [vmem:[%s1804_s22 + $0x5d] sm:$0x1] }
 0x227   : > { %v481_v43 = vpop.xlane.xlu0 %480 }
 0x228   : > { %1705 = vrcp.f32 %v481_v43  ;;  %v1178_v43 = vrot.slane %v1158_v21, 4 }
 0x22a   : > { %v1179_v60 = vsel %vm357_vm4, %v1178_v43, %v1177_v48 }
 0x232   : > { %v1706_v44 = vpop.eup %1705 }
 0x233   : > { %v483_v49 = vmul.f32 %v1706_v44, %v1861_v8  ;;  %v641_v8 = vsel %vm366_vm7, %v640_v28, %v639_v50  ;;  %v1559_v50 = vld [vmem:[%s1804_s22 + $0x15] sm:$0x1] }
 0x234   : > { %v759_v52 = vrot.slane %v1559_v50, 7 }
 0x235   : > { %1640 = vmatmul.mubr.msk.f32.vlgmr.msra.gmra.mrb[0].mxu1 %vm390_vm8, %v483_v49 }
 0x236   : > { %1643 = vmatpush3.xpose.msk.msra.mxu1 %vm390_vm8, %v1931_v26  ;;  %1644 = vmatprep.mubr.msk.f32.mxu1 %vm1744_vm0, %v1743_v0  ;;  %v1181_v26 = vsel %vm360_vm5, %v1180_v59, %v1179_v60  ;;  %v760_v58 = vsel %vm348_vm1, %v759_v52, %v1558_v53  ;;  %v763_v59 = vrot.slane %v1561_v55, 5  ;;  %v1607_v52 = vld [vmem:[%s1804_s22 + $0x5f] sm:$0x1] }
 0x237   : > { %1652 = vmatprep.subr.mxu1 %v1743_v0  ;;  %v1183_v9 = vsel %vm363_vm6, %v1182_v4, %v1181_v26  ;;  %v762_v60 = vsel %vm351_vm2, %v761_v56, %v760_v58  ;;  %v769_v4 = vrot.slane %v1564_v62, 2  ;;  %v771_v26 = vrot.slane %v1565_v2, 1 }
 0x238   : > { %v1185_v10 = vsel %vm366_vm7, %v1184_v6, %v1183_v9  ;;  %v764_v63 = vsel %vm354_vm3, %v763_v59, %v762_v60  ;;  %v1581_v9 = vld [vmem:[%s1804_s22 + $0x22] sm:$0x1]  ;;  %v1315_v59 = vrot.slane %v1607_v52, 1 }
 0x239   : > { %1645 = vmatmul.mubr.msk.f32.vlgmr.msra.gmra.mrb[2].mxu1 %vm390_vm8, %v641_v8  ;;  %v765_v8 = vrot.slane %v1562_v57, 4 }
 0x23a   : > { %1653 = vmatpush3.xpose.msk.msra.mxu1 %vm390_vm8, %v935_v1  ;;  %1654 = vmatprep.mubr.msk.f32.mxu1 %vm1744_vm0, %v1743_v0  ;;  %v767_v1 = vrot.slane %v1563_v54, 3 }
 0x23b   : > { %1662 = vmatprep.subr.mxu1 %v1743_v0  ;;  %v766_v3 = vsel %vm357_vm4, %v765_v8, %v764_v63 }
 0x23c   : > { %v768_v5 = vsel %vm360_vm5, %v767_v1, %v766_v3 }
 0x23d   : > { %1655 = vmatmul.mubr.msk.f32.vlgmr.msra.gmra.mrb[4].mxu1 %vm390_vm8, %v913_v14  ;;  %v770_v14 = vsel %vm363_vm6, %v769_v4, %v768_v5 }
 0x23e   : > { %1663 = vmatpush3.xpose.msk.msra.mxu1 %vm390_vm8, %v1207_v7  ;;  %1664 = vmatprep.mubr.msk.f32.mxu1 %vm1744_vm0, %v1743_v0  ;;  %v772_v6 = vsel %vm366_vm7, %v771_v26, %v770_v14  ;;  %v1580_v7 = vld [vmem:[%s1804_s22 + $0x16] sm:$0x1] }
 0x23f   : > { %1648 = vmatpush3.msra.mxu0 %v772_v6 }
 0x240   : > { %1657 = vmatprep.subr.mxu0 %v1743_v0 }
 0x241   : > { %1665 = vmatmul.mubr.msk.f32.vlgmr.msra.gmra.mrb[6].mxu1 %vm390_vm8, %v1185_v10  ;;  %v1031_v10 = vrot.slane %v1580_v7, 7 }
 0x308   : > { %v576_v11 = vpop.f32.mrb[0].mxu1 }
 0x309   : > { %580 = vst.msk [vmem:[%s2032_s19] sm:$0xff] %vm390_vm8, %v576_v11  ;;  %v1641_v12 = vpop.f32.mrb[1].mxu1  ;;  %v1579_v11 = vld [vmem:[%s1804_s22 + $0xa] sm:$0x1] }
 0x30a   : > { %v1601_v12 = vld [vmem:[%s1804_s22 + $0x17] sm:$0x1] }
 0x30c   : > { %v734_v15 = vpop.f32.mrb[2].mxu1 }
 0x30d   : > { %v735_v16 = vadd.f32 %v1567_v13, %v734_v15  ;;  %v1646_v17 = vpop.f32.mrb[3].mxu1  ;;  %v1582_v13 = vld [vmem:[%s1804_s22 + $0x2e] sm:$0x1]  ;;  %v1033_v15 = vrot.slane %v1581_v9, 6 }
 0x30e   : > { %v1602_v17 = vld [vmem:[%s1804_s22 + $0x23] sm:$0x1] }
 0x30f   : > { %v738_v19 = vmul.f32 0.17677669, %v735_v16  ;;  %v1032_v16 = vsel %vm348_vm1, %v1031_v10, %v1579_v11 }
 0x310   : > { %v1006_v20 = vpop.f32.mrb[4].mxu1 }
 0x311   : > { %v1007_v21 = vadd.f32 %v1588_v18, %v1006_v20  ;;  %v1656_v22 = vpop.f32.mrb[5].mxu1  ;;  %v739_v23 = vsel %vm471_vm10, -inf, %v738_v19  ;;  %v1303_v18 = vrot.slane %v1601_v12, 7  ;;  %v1600_v19 = vld [vmem:[%s1804_s22 + $0xb] sm:$0x1] }
 0x312   : > { %v740_v24 = vsel %vm390_vm8, %v739_v23, -inf  ;;  %v1583_v20 = vld [vmem:[%s1804_s22 + $0x3a] sm:$0x1]  ;;  %v1034_v22 = vsel %vm351_vm2, %v1033_v15, %v1032_v16 }
 0x313   : > { %v1010_v27 = vmul.f32 0.17677669, %v1007_v21  ;;  %741 = vmax.xlane.f32.xlu1 %v740_v24  ;;  %v1035_v21 = vrot.slane %v1582_v13, 5  ;;  %v1305_v24 = vrot.slane %v1602_v17, 6 }
 0x314   : > { %v1278_v28 = vpop.f32.mrb[6].mxu1 }
 0x315   : > { %v1279_v29 = vadd.f32 %v1609_v25, %v1278_v28  ;;  %v1666_v30 = vpop.f32.mrb[7].mxu1  ;;  %v1011_v31 = vsel %vm471_vm10, -inf, %v1010_v27  ;;  %v1304_v25 = vsel %vm348_vm1, %v1303_v18, %v1600_v19  ;;  %v1584_v27 = vld [vmem:[%s1804_s22 + $0x46] sm:$0x1]  ;;  %v1037_v28 = vrot.slane %v1583_v20, 4 }
 0x316   : > { %v1012_v32 = vsel %vm390_vm8, %v1011_v31, -inf  ;;  %v1036_v30 = vsel %vm354_vm3, %v1035_v21, %v1034_v22 }
 0x317   : > { %v1282_v34 = vmul.f32 0.17677669, %v1279_v29  ;;  %1013 = vmax.xlane.f32.xlu1 %v1012_v32 }
 0x319   : > { %v1283_v35 = vsel %vm471_vm10, -inf, %v1282_v34  ;;  %v1306_v34 = vsel %vm351_vm2, %v1305_v24, %v1304_v25 }
 0x31a   : > { %v1284_v36 = vsel %vm390_vm8, %v1283_v35, -inf }
 0x31b   : > { %1285 = vmax.xlane.f32.xlu0 %v1284_v36  ;;  %v1039_v36 = vrot.slane %v1584_v27, 3 }
 0x3a0   : > { %v742_v37 = vpop.xlane.xlu1 %741 }
 0x3a1   : > { %v743_v38 = vsub.f32 %v739_v23, %v742_v37  ;;  %v1603_v23 = vld [vmem:[%s1804_s22 + $0x2f] sm:$0x1]  ;;  %v1038_v37 = vsel %vm357_vm4, %v1037_v28, %v1036_v30 }
 0x3a2   : > { %v1307_v32 = vrot.slane %v1603_v23, 5 }
 0x3a3   : > { %v744_v39 = vmul.f32 1.442695, %v743_v38  ;;  %v1605_v38 = vld [vmem:[%s1804_s22 + $0x47] sm:$0x1] }
 0x3a4   : > { %v1014_v40 = vpop.xlane.xlu1 %1013 }
 0x3a5   : > { %1707 = vpow2.f32 %v744_v39  ;;  %v1015_v33 = vsub.f32 %v1011_v31, %v1014_v40  ;;  %v1604_v31 = vld [vmem:[%s1804_s22 + $0x3b] sm:$0x1] }
 0x3a6   : > { %v1309_v39 = vrot.slane %v1604_v31, 4 }
 0x3a7   : > { %v1016_v41 = vmul.f32 1.442695, %v1015_v33  ;;  %v1308_v33 = vsel %vm354_vm3, %v1307_v32, %v1306_v34 }
 0x3a8   : > { %v1286_v42 = vpop.xlane.xlu0 %1285 }
 0x3a9   : > { %1709 = vpow2.f32 %v1016_v41  ;;  %v1287_v43 = vsub.f32 %v1283_v35, %v1286_v42  ;;  %v1585_v35 = vld [vmem:[%s1804_s22 + $0x52] sm:$0x1]  ;;  %v1586_v41 = vld [vmem:[%s1804_s22 + $0x5e] sm:$0x1] }
 0x3aa   : > { %v1041_v42 = vrot.slane %v1585_v35, 2  ;;  %v1043_v50 = vrot.slane %v1586_v41, 1 }
 0x3ab   : > { %v1288_v44 = vmul.f32 1.442695, %v1287_v43  ;;  %v1040_v43 = vsel %vm360_vm5, %v1039_v36, %v1038_v37 }
 0x3ac   : > { %v1042_v51 = vsel %vm363_vm6, %v1041_v42, %v1040_v43 }
 0x3ad   : > { %1711 = vpow2.f32 %v1288_v44  ;;  %v1606_v44 = vld [vmem:[%s1804_s22 + $0x53] sm:$0x1]  ;;  %v1044_v58 = vsel %vm366_vm7, %v1043_v50, %v1042_v51 }
 0x3ae   : > { %v1313_v53 = vrot.slane %v1606_v44, 2 }
 0x3af   : > { %v2048_v61 = vpop.eup %1707 }
 0x3b0   : > { %v746_v46 = vsel %vm390_vm8, %v2048_v61, 0.0 }
 0x3b1   : > { %747 = vadd.xlane.f32.xlu1 %v746_v46  ;;  %v1311_v46 = vrot.slane %v1605_v38, 3 }
 0x3b3   : > { %v2052_v45 = vpop.eup %1709 }
 0x3b4   : > { %v1018_v47 = vsel %vm390_vm8, %v2052_v45, 0.0 }
 0x3b5   : > { %1019 = vadd.xlane.f32.xlu0 %v1018_v47  ;;  %v1310_v47 = vsel %vm357_vm4, %v1309_v39, %v1308_v33 }
 0x3b6   : > { %v1312_v55 = vsel %vm360_vm5, %v1311_v46, %v1310_v47 }
 0x3b7   : > { %v2056_v48 = vpop.eup %1711  ;;  %v1314_v54 = vsel %vm363_vm6, %v1313_v53, %v1312_v55 }
 0x3b8   : > { %v1290_v49 = vsel %vm390_vm8, %v2056_v48, 0.0  ;;  %v1316_v62 = vsel %vm366_vm7, %v1315_v59, %v1314_v54 }
 0x3b9   : > { %1291 = vadd.xlane.f32.xlu1 %v1290_v49 }
 0x43e   : > { %v748_v29 = vpop.xlane.xlu1 %747 }
 0x43f   : > { %1713 = vrcp.f32 %v748_v29 }
 0x442   : > { %v1020_v40 = vpop.xlane.xlu0 %1019 }
 0x443   : > { %1715 = vrcp.f32 %v1020_v40 }
 0x446   : > { %v1292_v49 = vpop.xlane.xlu1 %1291 }
 0x447   : > { %1717 = vrcp.f32 %v1292_v49 }
 0x449   : > { %v1714_v56 = vpop.eup %1713 }
 0x44a   : > { %v750_v57 = vmul.f32 %v1714_v56, %v2048_v61 }
 0x44c   : > { %1650 = vmatmul.mubr.msk.f32.vlgmr.msra.gmra.mrb[2].mxu0 %vm390_vm8, %v750_v57 }
 0x44d   : > { %v1716_v60 = vpop.eup %1715  ;;  %1658 = vmatpush3.msra.mxu0 %v1044_v58  ;;  %1659 = vmatprep.mubr.msk.f32.mxu0 %vm1744_vm0, %v1743_v0 }
 0x44e   : > { %v1022_v8 = vmul.f32 %v1716_v60, %v2052_v45  ;;  %1667 = vmatprep.subr.mxu0 %v1743_v0 }
 0x450   : > { %1660 = vmatmul.mubr.msk.f32.vlgmr.msra.gmra.mrb[4].mxu0 %vm390_vm8, %v1022_v8 }
 0x451   : > { %v1718_v61 = vpop.eup %1717  ;;  %1668 = vmatpush3.msra.mxu0 %v1316_v62  ;;  %1669 = vmatprep.mubr.msk.f32.mxu0 %vm1744_vm0, %v1743_v0 }
 0x452   : > { %v1294_v63 = vmul.f32 %v1718_v61, %v2056_v48 }
 0x454   : > { %1670 = vmatmul.mubr.msk.f32.vlgmr.msra.gmra.mrb[6].mxu0 %vm390_vm8, %v1294_v63 }
 0x51f   : > { %v843_v1 = vpop.f32.mrb[2].mxu0 }
 0x520   : > { %848 = vrot.lane.b32.xlu0 %v843_v1, %s1746_s15  ;;  %v1651_v45 = vpop.f32.mrb[3].mxu0 }
 0x523   : > { %v1115_v2 = vpop.f32.mrb[4].mxu0 }
 0x524   : > { %1120 = vrot.lane.b32.xlu1 %v1115_v2, %s1747_s20  ;;  %v1661_v3 = vpop.f32.mrb[5].mxu0 }
 0x527   : > { %v1387_v4 = vpop.f32.mrb[6].mxu0 }
 0x528   : > { %1392 = vrot.lane.b32.xlu1 %v1387_v4, %s1748_s21  ;;  %v1671_v5 = vpop.f32.mrb[7].mxu0 }
 0x592   : > { %v849_v0 = vpop.permute.xlu0 %848 }
 0x593   : > { %852 = vst.msk [vmem:[%s2032_s19] sm:$0xff] %vm851_vm11, %v849_v0 }
 0x596   : > { %v1121_v48 = vpop.permute.xlu1 %1120 }
 0x597   : > { %1124 = vst.msk [vmem:[%s2032_s19] sm:$0xff] %vm1123_vm12, %v1121_v48 }
 0x59a   : > { %v1393_v26 = vpop.permute.xlu1 %1392 }
 0x59b   : > { %1396 = vst.msk [vmem:[%s2032_s19] sm:$0xff] %vm1395_vm13, %v1393_v26 }
 0x59c PF: > { %s14_s17 = sadd.s32 1, %s1741_s17   ;;  %s2134_s15 = smov %s1737_s16 }
 0x59d   : > { %p11_p5 = scmp.ge.s32.totalorder %s14_s17, 4   ;;  %s2135_s16 = smov %s2137_s18 }
 0x59f   :  { %13 = sbr.rel (!%p11_p5) target bundleno = 2 (0x2), region = 80 }

</bundles_post_ra>
